<compile_context>
chip_gen: v6e
topology: v6e:2x2x1
jax: 0.10.0
libtpu: 0.0.40
codegen_flags: <defaults>
</compile_context>

<pallas_src>
import functools
import math

import jax
import jax.numpy as jnp
from jax.experimental import pallas as pl
from jax.experimental.pallas import tpu as pltpu


# -----------------------------------------------------------------------------
# Chip-aware helpers.
# -----------------------------------------------------------------------------
def _vmem_capacity_bytes():
    try:
        return int(pltpu.get_tpu_info().vmem_capacity_bytes)
    except Exception:
        return 64 * 1024 * 1024        # conservative: v7x per-TensorCore VMEM


def _round_up(x, m):
    return (x + m - 1) // m * m


def _padded_block_bytes(shape, dtype):
    """Bytes of one VMEM block including (8, 128) sublane/lane padding."""
    dims = [int(d) for d in shape]
    dims[-1] = _round_up(dims[-1], 128)
    if len(dims) >= 2:
        dims[-2] = _round_up(dims[-2], 8)
    n = 1
    for d in dims:
        n *= d
    return n * jnp.dtype(dtype).itemsize


def _choose_q_tile(seq_len, vmem_capacity):
    # v7x exposes ~64 MiB of VMEM per TensorCore (v5e/v6e: 128 MiB); cap the
    # query tile lower there.  Per-head softmax keeps the live set small either
    # way, so the tile mostly sizes the q/out blocks.
    cap = 512 if vmem_capacity > (96 << 20) else 256
    if seq_len <= cap:
        return seq_len
    for t in (512, 256, 128, 64, 32, 16, 8):
        if t <= cap and seq_len % t == 0:
            return t
    # TODO(synk): sequence lengths with no small divisor fall back to a single
    # full-length tile (correct, but VMEM-hungry for very large odd S).
    return seq_len


def _vmem_limit(demand_bytes, capacity):
    limit = max(int(demand_bytes * 1.5) + (4 << 20), 32 << 20)
    return int(min(limit, int(0.85 * capacity)))


# -----------------------------------------------------------------------------
# Kernel 1: fused QKV projection -> head-major Q/K/V.
# -----------------------------------------------------------------------------
def _qkv_projection_kernel(x_ref, w_ref, b_ref, q_ref, k_ref, v_ref, *,
                           num_heads, head_dim):
    """grid = (batch, seq_tile).

    x_ref : [1, ts, H]   hidden states (native dtype)
    w_ref : [H, 3H]      fused Wq|Wk|Wv (scale folded into Wq columns)
    b_ref : [1, 3H]      fused bias (f32, scale folded into the bq part)
    q/k/v_ref : [1, nh, ts, dh]  head-major outputs
    """
    nh, dh = num_heads, head_dim
    H = nh * dh
    x = x_ref[0]                                                   # [ts, H]
    qkv = jnp.dot(x, w_ref[...], preferred_element_type=jnp.float32)  # [ts, 3H]
    qkv = (qkv + b_ref[...]).astype(q_ref.dtype)
    # transpose_for_scores: static lane slices + leading-axis stores.  This
    # relayout now lives in a fully pipelined, "parallel" projection call, off
    # the attention critical path.
    for h in range(nh):
        q_ref[0, h] = qkv[:, h * dh:(h + 1) * dh]
        k_ref[0, h] = qkv[:, H + h * dh:H + (h + 1) * dh]
        v_ref[0, h] = qkv[:, 2 * H + h * dh:2 * H + (h + 1) * dh]


def _project_qkv(x, w_qkv, b_qkv, *, num_heads, head_dim, seq_tile,
                 vmem_limit_bytes, single_buffer_consts):
    B, S, H = x.shape
    nh, dh, ts = num_heads, head_dim, seq_tile
    # Constant-index blocks: single-buffer them (their block index never
    # changes, so default double buffering is dead VMEM).
    const_kwargs = (dict(pipeline_mode=pl.Buffered(1))
                    if single_buffer_consts else {})

    kernel = functools.partial(_qkv_projection_kernel,
                               num_heads=nh, head_dim=dh)
    qkv_shape = jax.ShapeDtypeStruct((B, nh, S, dh), x.dtype)
    grid_spec = pltpu.PrefetchScalarGridSpec(
        num_scalar_prefetch=0,
        grid=(B, S // ts),
        in_specs=[
            pl.BlockSpec((1, ts, H), lambda b, s: (b, s, 0)),
            pl.BlockSpec((H, 3 * H), lambda b, s: (0, 0), **const_kwargs),
            pl.BlockSpec((1, 3 * H), lambda b, s: (0, 0), **const_kwargs),
        ],
        out_specs=(
            pl.BlockSpec((1, nh, ts, dh), lambda b, s: (b, 0, s, 0)),
            pl.BlockSpec((1, nh, ts, dh), lambda b, s: (b, 0, s, 0)),
            pl.BlockSpec((1, nh, ts, dh), lambda b, s: (b, 0, s, 0)),
        ),
    )
    return pl.pallas_call(
        kernel,
        out_shape=(qkv_shape, qkv_shape, qkv_shape),
        grid_spec=grid_spec,
        compiler_params=pltpu.CompilerParams(
            dimension_semantics=("parallel", "parallel"),
            vmem_limit_bytes=vmem_limit_bytes,
        ),
    )(x, w_qkv, b_qkv)


# -----------------------------------------------------------------------------
# Kernel 2: per-(batch, q-tile) multi-head attention with per-head softmax.
# -----------------------------------------------------------------------------
def _attention_kernel(q_ref, k_ref, v_ref, mask_ref, out_ref, *,
                      num_heads, head_dim):
    """grid = (batch, query_tile).

    q_ref   : [1, nh, tq, dh]
    k_ref   : [1, nh, S,  dh]   (resident across q tiles: index depends on b only)
    v_ref   : [1, nh, S,  dh]
    mask_ref: [1, 1, S]         additive attention mask (broadcast over heads/q)
    out_ref : [1, tq, H]        lane-dense context output block
    """
    nh, dh = num_heads, head_dim
    mask = mask_ref[0].astype(jnp.float32)                         # [1, S]

    for h in range(nh):                                            # static unroll
        q = q_ref[0, h]                                            # [tq, dh]
        k = k_ref[0, h]                                            # [S,  dh]
        v = v_ref[0, h]                                            # [S,  dh]

        # Scores (1/sqrt(dh) already folded into Wq/bq); contraction over dh.
        s = jax.lax.dot_general(q, k, (((1,), (1,)), ((), ())),
                                preferred_element_type=jnp.float32)  # [tq, S]
        s = s + mask

        # Numerically-stable softmax with deferred normalisation.
        m = jnp.max(s, axis=-1, keepdims=True)                     # [tq, 1]
        e = jnp.exp(s - m)                                         # [tq, S]
        l = jnp.sum(e, axis=-1, keepdims=True)                     # [tq, 1]

        ctx = jax.lax.dot_general(e.astype(v.dtype), v,
                                  (((1,), (0,)), ((), ())),
                                  preferred_element_type=jnp.float32)  # [tq, dh]
        # Exact reciprocal on [tq, 1] then a [tq, dh] multiply: S/dh fewer
        # VALU ops than normalising the [tq, S] probabilities.
        ctx = ctx * pl.reciprocal(l, approx=False)

        # Write this head's slab straight into the lane-dense output block;
        # the HBM writeback of the (1, tq, H) block is a single full-width DMA.
        out_ref[0, :, h * dh:(h + 1) * dh] = ctx.astype(out_ref.dtype)


# -----------------------------------------------------------------------------
# Public wrapper.
# -----------------------------------------------------------------------------
def splicebert_self_attention(hidden_states, wq, bq, wk, bk, wv, bv,
                              attention_mask, *, num_heads, q_tile=None,
                              compute_dtype=None):
    """SpliceBertSelfAttention.forward (context_layer only).

    hidden_states : [B, S, H]
    wq/wk/wv      : [H, H]   (transpose of torch nn.Linear.weight, so y = x@W+b)
    bq/bk/bv      : [H]
    attention_mask: [B, 1, S] additive mask (HF extended mask broadcast over
                    heads and query positions); 0 = keep, large negative = mask.
    compute_dtype : optional dtype (e.g. jnp.bfloat16) for the MXU/DMA path.
    """
    B, S, H = hidden_states.shape
    assert H % num_heads == 0
    dh = H // num_heads
    out_dtype = hidden_states.dtype
    scale = 1.0 / math.sqrt(dh)

    # Fuse Q|K|V into one [H, 3H] weight (single wide MXU matmul) and fold the
    # 1/sqrt(dh) score scale into the Q columns/bias on the host (free).
    w_qkv = jnp.concatenate([wq * scale, wk, wv], axis=1)
    b_qkv = jnp.concatenate([bq * scale, bk, bv]).astype(jnp.float32)
    b_qkv = b_qkv.reshape(1, 3 * H)

    if compute_dtype is not None:
        hidden_states = hidden_states.astype(compute_dtype)
        w_qkv = w_qkv.astype(compute_dtype)
    qkv_dtype = hidden_states.dtype

    vmem_cap = _vmem_capacity_bytes()
    tq = _choose_q_tile(S, vmem_cap) if q_tile is None else q_tile
    assert S % tq == 0, "q_tile must divide the sequence length"

    # --- VMEM demand estimates (double-buffered blocks + live temporaries) ---
    proj_demand = (
        2 * _padded_block_bytes((tq, H), qkv_dtype)                 # x block
        + 2 * _padded_block_bytes((H, 3 * H), qkv_dtype)            # weights
        + 2 * _padded_block_bytes((1, 3 * H), jnp.float32)          # bias
        + 3 * 2 * _padded_block_bytes((num_heads, tq, dh), qkv_dtype)  # q/k/v out
        + 2 * _padded_block_bytes((tq, 3 * H), jnp.float32))        # f32 acc
    attn_demand = (
        2 * _padded_block_bytes((num_heads, tq, dh), qkv_dtype)     # q block
        + 2 * 2 * _padded_block_bytes((num_heads, S, dh), qkv_dtype)  # k, v
        + 2 * _padded_block_bytes((1, S), jnp.float32)              # mask
        + 2 * _padded_block_bytes((tq, H), out_dtype)               # out block
        + 3 * _padded_block_bytes((tq, S), jnp.float32))            # s/e temporaries

    # --- QKV projection call (Buffered(1) on constants, with fallback). ------
    def _call_projection(single_buffer_consts):
        return _project_qkv(
            hidden_states, w_qkv, b_qkv,
            num_heads=num_heads, head_dim=dh, seq_tile=tq,
            vmem_limit_bytes=_vmem_limit(proj_demand, vmem_cap),
            single_buffer_consts=single_buffer_consts)

    try:
        q, k, v = _call_projection(True)
    except Exception:
        # pl.Buffered(1) not supported by this jax build: fall back to the
        # default double-buffered constant blocks (correctness unaffected).
        q, k, v = _call_projection(False)

    # --- Attention call: both grid axes parallel, per-head softmax inside. ---
    kernel = functools.partial(_attention_kernel,
                               num_heads=num_heads, head_dim=dh)
    grid_spec = pltpu.PrefetchScalarGridSpec(
        num_scalar_prefetch=0,
        grid=(B, S // tq),
        in_specs=[
            pl.BlockSpec((1, num_heads, tq, dh), lambda b, i: (b, 0, i, 0)),
            pl.BlockSpec((1, num_heads, S, dh), lambda b, i: (b, 0, 0, 0)),
            pl.BlockSpec((1, num_heads, S, dh), lambda b, i: (b, 0, 0, 0)),
            pl.BlockSpec((1, 1, S), lambda b, i: (b, 0, 0)),
        ],
        out_specs=pl.BlockSpec((1, tq, H), lambda b, i: (b, i, 0)),
    )
    out = pl.pallas_call(
        kernel,
        out_shape=jax.ShapeDtypeStruct((B, S, H), out_dtype),
        grid_spec=grid_spec,
        compiler_params=pltpu.CompilerParams(
            dimension_semantics=("parallel", "parallel"),
            vmem_limit_bytes=_vmem_limit(attn_demand, vmem_cap),
        ),
    )(q, k, v, attention_mask)
    return out


# -----------------------------------------------------------------------------
# Pure-JAX reference (mirrors the torch module, f32 / highest matmul precision).
# -----------------------------------------------------------------------------
def _reference(hidden_states, wq, bq, wk, bk, wv, bv, attention_mask, num_heads):
    B, S, H = hidden_states.shape
    dh = H // num_heads
    x = hidden_states.astype(jnp.float32)
    hi = jax.lax.Precision.HIGHEST

    def proj(w, b):
        t = jnp.dot(x, w.astype(jnp.float32), precision=hi) + b.astype(jnp.float32)
        return t.reshape(B, S, num_heads, dh).transpose(0, 2, 1, 3)  # [B,nh,S,dh]

    q, k, v = proj(wq, bq), proj(wk, bk), proj(wv, bv)
    scores = jnp.einsum("bhqd,bhkd->bhqk", q, k, precision=hi) / math.sqrt(dh)
    scores = scores + attention_mask[:, None, :, :].astype(jnp.float32)
    probs = jax.nn.softmax(scores, axis=-1)
    ctx = jnp.einsum("bhqk,bhkd->bhqd", probs, v, precision=hi)      # [B,nh,S,dh]
    return ctx.transpose(0, 2, 1, 3).reshape(B, S, H)


if __name__ == "__main__":
    # Small config: batch=2, seq=8, hidden=32, heads=4 (head_dim=8).
    B, S, H, NH = 2, 8, 32, 4

    key = jax.random.PRNGKey(0)
    ks = jax.random.split(key, 7)
    w_scale = 0.05
    hidden_states = jax.random.normal(ks[0], (B, S, H), jnp.float32)
    wq = w_scale * jax.random.normal(ks[1], (H, H), jnp.float32)
    bq = w_scale * jax.random.normal(ks[2], (H,), jnp.float32)
    wk = w_scale * jax.random.normal(ks[3], (H, H), jnp.float32)
    bk = w_scale * jax.random.normal(ks[4], (H,), jnp.float32)
    wv = w_scale * jax.random.normal(ks[5], (H, H), jnp.float32)
    bv = w_scale * jax.random.normal(ks[6], (H,), jnp.float32)

    # Additive attention mask [B, 1, S]: last two key positions of batch 1 masked.
    mask = jnp.zeros((B, 1, S), jnp.float32)
    mask = mask.at[1, 0, S - 2:].set(-1e9)

    out = splicebert_self_attention(hidden_states, wq, bq, wk, bk, wv, bv,
                                    mask, num_heads=NH)
    out = jax.block_until_ready(out)

    ref = _reference(hidden_states, wq, bq, wk, bk, wv, bv, mask, NH)
    assert out.shape == (B, S, H)
    assert out.dtype == hidden_states.dtype
    # Exact softmax normalisation is used now (no approx reciprocal); the
    # residual tolerance only covers MXU f32 pass decomposition differences.
    assert jnp.allclose(out.astype(jnp.float32), ref, atol=2e-3, rtol=2e-3), \
        "mismatch vs reference"

    print("KERNEL_OK")
</pallas_src>

<mosaic_0001>
module attributes {stable_mosaic.version = 11 : i64} {
  func.func @_qkv_projection_kernel(%arg0: i32, %arg1: i32, %arg2: memref<1x8x32xf32, #tpu.memory_space<vmem>>, %arg3: memref<32x96xf32, #tpu.memory_space<vmem>>, %arg4: memref<1x96xf32, #tpu.memory_space<vmem>>, %arg5: memref<1x4x8x8xf32, #tpu.memory_space<vmem>>, %arg6: memref<1x4x8x8xf32, #tpu.memory_space<vmem>>, %arg7: memref<1x4x8x8xf32, #tpu.memory_space<vmem>>) attributes {dimension_semantics = [#tpu.dimension_semantics<parallel>, #tpu.dimension_semantics<parallel>], iteration_bounds = array<i64: 2, 1>, scalar_prefetch = 0 : i64, scratch_operands = 0 : i64, tpu.core_type = #tpu.core_type<tc>, window_params = [{transform_indices = @transform_0, window_bounds = array<i64: 1, 8, 32>}, {pipeline_mode = #tpu.pipeline_mode<synchronous>, transform_indices = @transform_1, window_bounds = array<i64: 32, 96>}, {pipeline_mode = #tpu.pipeline_mode<synchronous>, transform_indices = @transform_2, window_bounds = array<i64: 1, 96>}, {transform_indices = @transform_3, window_bounds = array<i64: 1, 4, 8, 8>}, {transform_indices = @transform_4, window_bounds = array<i64: 1, 4, 8, 8>}, {transform_indices = @transform_5, window_bounds = array<i64: 1, 4, 8, 8>}]} {
    %c0 = arith.constant 0 : index
    %c0_0 = arith.constant 0 : index
    %c0_1 = arith.constant 0 : index
    %0 = vector.load %arg2[%c0, %c0_0, %c0_1] : memref<1x8x32xf32, #tpu.memory_space<vmem>>, vector<1x8x32xf32>
    %1 = vector.shape_cast %0 : vector<1x8x32xf32> to vector<8x32xf32>
    %c0_2 = arith.constant 0 : index
    %c0_3 = arith.constant 0 : index
    %2 = vector.load %arg3[%c0_2, %c0_3] : memref<32x96xf32, #tpu.memory_space<vmem>>, vector<32x96xf32>
    %cst = arith.constant dense<0.000000e+00> : vector<8x96xf32>
    %3 = tpu.matmul %1, %2, %cst {dimension_numbers = #tpu.dot_dimension_numbers<[1], [0], [0], [1], [0, 0, 1, 1], [], []>} : vector<8x32xf32>, vector<32x96xf32>, vector<8x96xf32> -> vector<8x96xf32>
    %c0_4 = arith.constant 0 : index
    %c0_5 = arith.constant 0 : index
    %4 = vector.load %arg4[%c0_4, %c0_5] : memref<1x96xf32, #tpu.memory_space<vmem>>, vector<1x96xf32>
    %5 = vector.broadcast %4 : vector<1x96xf32> to vector<8x96xf32>
    %6 = arith.addf %3, %5 : vector<8x96xf32>
    %7 = vector.extract_strided_slice %6 {offsets = [0, 0], sizes = [8, 8], strides = [1, 1]} : vector<8x96xf32> to vector<8x8xf32>
    %c0_6 = arith.constant 0 : index
    %c0_7 = arith.constant 0 : index
    %c0_8 = arith.constant 0 : index
    %c0_9 = arith.constant 0 : index
    %8 = vector.load %arg5[%c0_6, %c0_7, %c0_8, %c0_9] : memref<1x4x8x8xf32, #tpu.memory_space<vmem>>, vector<1x1x8x8xf32>
    %9 = vector.shape_cast %8 : vector<1x1x8x8xf32> to vector<8x8xf32>
    %10 = vector.shape_cast %7 : vector<8x8xf32> to vector<1x1x8x8xf32>
    tpu.vector_store %arg5[%c0_6, %c0_7, %c0_8, %c0_9], %10 {strides = array<i32>} : memref<1x4x8x8xf32, #tpu.memory_space<vmem>>, vector<1x1x8x8xf32>,
    %11 = vector.extract_strided_slice %6 {offsets = [0, 32], sizes = [8, 8], strides = [1, 1]} : vector<8x96xf32> to vector<8x8xf32>
    %c0_10 = arith.constant 0 : index
    %c0_11 = arith.constant 0 : index
    %c0_12 = arith.constant 0 : index
    %c0_13 = arith.constant 0 : index
    %12 = vector.load %arg6[%c0_10, %c0_11, %c0_12, %c0_13] : memref<1x4x8x8xf32, #tpu.memory_space<vmem>>, vector<1x1x8x8xf32>
    %13 = vector.shape_cast %12 : vector<1x1x8x8xf32> to vector<8x8xf32>
    %14 = vector.shape_cast %11 : vector<8x8xf32> to vector<1x1x8x8xf32>
    tpu.vector_store %arg6[%c0_10, %c0_11, %c0_12, %c0_13], %14 {strides = array<i32>} : memref<1x4x8x8xf32, #tpu.memory_space<vmem>>, vector<1x1x8x8xf32>,
    %15 = vector.extract_strided_slice %6 {offsets = [0, 64], sizes = [8, 8], strides = [1, 1]} : vector<8x96xf32> to vector<8x8xf32>
    %c0_14 = arith.constant 0 : index
    %c0_15 = arith.constant 0 : index
    %c0_16 = arith.constant 0 : index
    %c0_17 = arith.constant 0 : index
    %16 = vector.load %arg7[%c0_14, %c0_15, %c0_16, %c0_17] : memref<1x4x8x8xf32, #tpu.memory_space<vmem>>, vector<1x1x8x8xf32>
    %17 = vector.shape_cast %16 : vector<1x1x8x8xf32> to vector<8x8xf32>
    %18 = vector.shape_cast %15 : vector<8x8xf32> to vector<1x1x8x8xf32>
    tpu.vector_store %arg7[%c0_14, %c0_15, %c0_16, %c0_17], %18 {strides = array<i32>} : memref<1x4x8x8xf32, #tpu.memory_space<vmem>>, vector<1x1x8x8xf32>,
    %19 = vector.extract_strided_slice %6 {offsets = [0, 8], sizes = [8, 8], strides = [1, 1]} : vector<8x96xf32> to vector<8x8xf32>
    %c0_18 = arith.constant 0 : index
    %c1 = arith.constant 1 : index
    %c0_19 = arith.constant 0 : index
    %c0_20 = arith.constant 0 : index
    %20 = vector.load %arg5[%c0_18, %c1, %c0_19, %c0_20] : memref<1x4x8x8xf32, #tpu.memory_space<vmem>>, vector<1x1x8x8xf32>
    %21 = vector.shape_cast %20 : vector<1x1x8x8xf32> to vector<8x8xf32>
    %22 = vector.shape_cast %19 : vector<8x8xf32> to vector<1x1x8x8xf32>
    tpu.vector_store %arg5[%c0_18, %c1, %c0_19, %c0_20], %22 {strides = array<i32>} : memref<1x4x8x8xf32, #tpu.memory_space<vmem>>, vector<1x1x8x8xf32>,
    %23 = vector.extract_strided_slice %6 {offsets = [0, 40], sizes = [8, 8], strides = [1, 1]} : vector<8x96xf32> to vector<8x8xf32>
    %c0_21 = arith.constant 0 : index
    %c1_22 = arith.constant 1 : index
    %c0_23 = arith.constant 0 : index
    %c0_24 = arith.constant 0 : index
    %24 = vector.load %arg6[%c0_21, %c1_22, %c0_23, %c0_24] : memref<1x4x8x8xf32, #tpu.memory_space<vmem>>, vector<1x1x8x8xf32>
    %25 = vector.shape_cast %24 : vector<1x1x8x8xf32> to vector<8x8xf32>
    %26 = vector.shape_cast %23 : vector<8x8xf32> to vector<1x1x8x8xf32>
    tpu.vector_store %arg6[%c0_21, %c1_22, %c0_23, %c0_24], %26 {strides = array<i32>} : memref<1x4x8x8xf32, #tpu.memory_space<vmem>>, vector<1x1x8x8xf32>,
    %27 = vector.extract_strided_slice %6 {offsets = [0, 72], sizes = [8, 8], strides = [1, 1]} : vector<8x96xf32> to vector<8x8xf32>
    %c0_25 = arith.constant 0 : index
    %c1_26 = arith.constant 1 : index
    %c0_27 = arith.constant 0 : index
    %c0_28 = arith.constant 0 : index
    %28 = vector.load %arg7[%c0_25, %c1_26, %c0_27, %c0_28] : memref<1x4x8x8xf32, #tpu.memory_space<vmem>>, vector<1x1x8x8xf32>
    %29 = vector.shape_cast %28 : vector<1x1x8x8xf32> to vector<8x8xf32>
    %30 = vector.shape_cast %27 : vector<8x8xf32> to vector<1x1x8x8xf32>
    tpu.vector_store %arg7[%c0_25, %c1_26, %c0_27, %c0_28], %30 {strides = array<i32>} : memref<1x4x8x8xf32, #tpu.memory_space<vmem>>, vector<1x1x8x8xf32>,
    %31 = vector.extract_strided_slice %6 {offsets = [0, 16], sizes = [8, 8], strides = [1, 1]} : vector<8x96xf32> to vector<8x8xf32>
    %c0_29 = arith.constant 0 : index
    %c2 = arith.constant 2 : index
    %c0_30 = arith.constant 0 : index
    %c0_31 = arith.constant 0 : index
    %32 = vector.load %arg5[%c0_29, %c2, %c0_30, %c0_31] : memref<1x4x8x8xf32, #tpu.memory_space<vmem>>, vector<1x1x8x8xf32>
    %33 = vector.shape_cast %32 : vector<1x1x8x8xf32> to vector<8x8xf32>
    %34 = vector.shape_cast %31 : vector<8x8xf32> to vector<1x1x8x8xf32>
    tpu.vector_store %arg5[%c0_29, %c2, %c0_30, %c0_31], %34 {strides = array<i32>} : memref<1x4x8x8xf32, #tpu.memory_space<vmem>>, vector<1x1x8x8xf32>,
    %35 = vector.extract_strided_slice %6 {offsets = [0, 48], sizes = [8, 8], strides = [1, 1]} : vector<8x96xf32> to vector<8x8xf32>
    %c0_32 = arith.constant 0 : index
    %c2_33 = arith.constant 2 : index
    %c0_34 = arith.constant 0 : index
    %c0_35 = arith.constant 0 : index
    %36 = vector.load %arg6[%c0_32, %c2_33, %c0_34, %c0_35] : memref<1x4x8x8xf32, #tpu.memory_space<vmem>>, vector<1x1x8x8xf32>
    %37 = vector.shape_cast %36 : vector<1x1x8x8xf32> to vector<8x8xf32>
    %38 = vector.shape_cast %35 : vector<8x8xf32> to vector<1x1x8x8xf32>
    tpu.vector_store %arg6[%c0_32, %c2_33, %c0_34, %c0_35], %38 {strides = array<i32>} : memref<1x4x8x8xf32, #tpu.memory_space<vmem>>, vector<1x1x8x8xf32>,
    %39 = vector.extract_strided_slice %6 {offsets = [0, 80], sizes = [8, 8], strides = [1, 1]} : vector<8x96xf32> to vector<8x8xf32>
    %c0_36 = arith.constant 0 : index
    %c2_37 = arith.constant 2 : index
    %c0_38 = arith.constant 0 : index
    %c0_39 = arith.constant 0 : index
    %40 = vector.load %arg7[%c0_36, %c2_37, %c0_38, %c0_39] : memref<1x4x8x8xf32, #tpu.memory_space<vmem>>, vector<1x1x8x8xf32>
    %41 = vector.shape_cast %40 : vector<1x1x8x8xf32> to vector<8x8xf32>
    %42 = vector.shape_cast %39 : vector<8x8xf32> to vector<1x1x8x8xf32>
    tpu.vector_store %arg7[%c0_36, %c2_37, %c0_38, %c0_39], %42 {strides = array<i32>} : memref<1x4x8x8xf32, #tpu.memory_space<vmem>>, vector<1x1x8x8xf32>,
    %43 = vector.extract_strided_slice %6 {offsets = [0, 24], sizes = [8, 8], strides = [1, 1]} : vector<8x96xf32> to vector<8x8xf32>
    %c0_40 = arith.constant 0 : index
    %c3 = arith.constant 3 : index
    %c0_41 = arith.constant 0 : index
    %c0_42 = arith.constant 0 : index
    %44 = vector.load %arg5[%c0_40, %c3, %c0_41, %c0_42] : memref<1x4x8x8xf32, #tpu.memory_space<vmem>>, vector<1x1x8x8xf32>
    %45 = vector.shape_cast %44 : vector<1x1x8x8xf32> to vector<8x8xf32>
    %46 = vector.shape_cast %43 : vector<8x8xf32> to vector<1x1x8x8xf32>
    tpu.vector_store %arg5[%c0_40, %c3, %c0_41, %c0_42], %46 {strides = array<i32>} : memref<1x4x8x8xf32, #tpu.memory_space<vmem>>, vector<1x1x8x8xf32>,
    %47 = vector.extract_strided_slice %6 {offsets = [0, 56], sizes = [8, 8], strides = [1, 1]} : vector<8x96xf32> to vector<8x8xf32>
    %c0_43 = arith.constant 0 : index
    %c3_44 = arith.constant 3 : index
    %c0_45 = arith.constant 0 : index
    %c0_46 = arith.constant 0 : index
    %48 = vector.load %arg6[%c0_43, %c3_44, %c0_45, %c0_46] : memref<1x4x8x8xf32, #tpu.memory_space<vmem>>, vector<1x1x8x8xf32>
    %49 = vector.shape_cast %48 : vector<1x1x8x8xf32> to vector<8x8xf32>
    %50 = vector.shape_cast %47 : vector<8x8xf32> to vector<1x1x8x8xf32>
    tpu.vector_store %arg6[%c0_43, %c3_44, %c0_45, %c0_46], %50 {strides = array<i32>} : memref<1x4x8x8xf32, #tpu.memory_space<vmem>>, vector<1x1x8x8xf32>,
    %51 = vector.extract_strided_slice %6 {offsets = [0, 88], sizes = [8, 8], strides = [1, 1]} : vector<8x96xf32> to vector<8x8xf32>
    %c0_47 = arith.constant 0 : index
    %c3_48 = arith.constant 3 : index
    %c0_49 = arith.constant 0 : index
    %c0_50 = arith.constant 0 : index
    %52 = vector.load %arg7[%c0_47, %c3_48, %c0_49, %c0_50] : memref<1x4x8x8xf32, #tpu.memory_space<vmem>>, vector<1x1x8x8xf32>
    %53 = vector.shape_cast %52 : vector<1x1x8x8xf32> to vector<8x8xf32>
    %54 = vector.shape_cast %51 : vector<8x8xf32> to vector<1x1x8x8xf32>
    tpu.vector_store %arg7[%c0_47, %c3_48, %c0_49, %c0_50], %54 {strides = array<i32>} : memref<1x4x8x8xf32, #tpu.memory_space<vmem>>, vector<1x1x8x8xf32>,
    return
  }
  func.func @transform_0(%arg0: i32, %arg1: i32) -> (i32, i32, i32) {
    %c0_i32 = arith.constant 0 : i32
    %c0_i32_0 = arith.constant 0 : i32
    return %arg0, %arg1, %c0_i32 : i32, i32, i32
  }
  func.func @transform_1(%arg0: i32, %arg1: i32) -> (i32, i32) {
    %c0_i32 = arith.constant 0 : i32
    %c0_i32_0 = arith.constant 0 : i32
    %c0_i32_1 = arith.constant 0 : i32
    return %c0_i32, %c0_i32_0 : i32, i32
  }
  func.func @transform_2(%arg0: i32, %arg1: i32) -> (i32, i32) {
    %c0_i32 = arith.constant 0 : i32
    %c0_i32_0 = arith.constant 0 : i32
    %c0_i32_1 = arith.constant 0 : i32
    return %c0_i32, %c0_i32_0 : i32, i32
  }
  func.func @transform_3(%arg0: i32, %arg1: i32) -> (i32, i32, i32, i32) {
    %c0_i32 = arith.constant 0 : i32
    %c0_i32_0 = arith.constant 0 : i32
    %c0_i32_1 = arith.constant 0 : i32
    return %arg0, %c0_i32, %arg1, %c0_i32_0 : i32, i32, i32, i32
  }
  func.func @transform_4(%arg0: i32, %arg1: i32) -> (i32, i32, i32, i32) {
    %c0_i32 = arith.constant 0 : i32
    %c0_i32_0 = arith.constant 0 : i32
    %c0_i32_1 = arith.constant 0 : i32
    return %arg0, %c0_i32, %arg1, %c0_i32_0 : i32, i32, i32, i32
  }
  func.func @transform_5(%arg0: i32, %arg1: i32) -> (i32, i32, i32, i32) {
    %c0_i32 = arith.constant 0 : i32
    %c0_i32_0 = arith.constant 0 : i32
    %c0_i32_1 = arith.constant 0 : i32
    return %arg0, %c0_i32, %arg1, %c0_i32_0 : i32, i32, i32, i32
  }
}

module attributes {stable_mosaic.version = 11 : i64} {
  func.func @_qkv_projection_kernel(%arg0: i32, %arg1: i32, %arg2: memref<1x8x32xf32, #tpu.memory_space<vmem>>, %arg3: memref<32x96xf32, #tpu.memory_space<vmem>>, %arg4: memref<1x96xf32, #tpu.memory_space<vmem>>, %arg5: memref<1x4x8x8xf32, #tpu.memory_space<vmem>>, %arg6: memref<1x4x8x8xf32, #tpu.memory_space<vmem>>, %arg7: memref<1x4x8x8xf32, #tpu.memory_space<vmem>>) attributes {dimension_semantics = [#tpu.dimension_semantics<parallel>, #tpu.dimension_semantics<parallel>], iteration_bounds = array<i64: 2, 1>, scalar_prefetch = 0 : i64, scratch_operands = 0 : i64, tpu.core_type = #tpu.core_type<tc>, window_params = [{transform_indices = @transform_0, window_bounds = array<i64: 1, 8, 32>}, {pipeline_mode = #tpu.pipeline_mode<synchronous>, transform_indices = @transform_1, window_bounds = array<i64: 32, 96>}, {pipeline_mode = #tpu.pipeline_mode<synchronous>, transform_indices = @transform_2, window_bounds = array<i64: 1, 96>}, {transform_indices = @transform_3, window_bounds = array<i64: 1, 4, 8, 8>}, {transform_indices = @transform_4, window_bounds = array<i64: 1, 4, 8, 8>}, {transform_indices = @transform_5, window_bounds = array<i64: 1, 4, 8, 8>}]} {
    %c0 = arith.constant 0 : index
    %c0_0 = arith.constant 0 : index
    %c0_1 = arith.constant 0 : index
    %0 = vector.load %arg2[%c0, %c0_0, %c0_1] : memref<1x8x32xf32, #tpu.memory_space<vmem>>, vector<1x8x32xf32>
    %1 = vector.shape_cast %0 : vector<1x8x32xf32> to vector<8x32xf32>
    %c0_2 = arith.constant 0 : index
    %c0_3 = arith.constant 0 : index
    %2 = vector.load %arg3[%c0_2, %c0_3] : memref<32x96xf32, #tpu.memory_space<vmem>>, vector<32x96xf32>
    %cst = arith.constant dense<0.000000e+00> : vector<8x96xf32>
    %3 = tpu.matmul %1, %2, %cst {dimension_numbers = #tpu.dot_dimension_numbers<[1], [0], [0], [1], [0, 0, 1, 1], [], []>} : vector<8x32xf32>, vector<32x96xf32>, vector<8x96xf32> -> vector<8x96xf32>
    %c0_4 = arith.constant 0 : index
    %c0_5 = arith.constant 0 : index
    %4 = vector.load %arg4[%c0_4, %c0_5] : memref<1x96xf32, #tpu.memory_space<vmem>>, vector<1x96xf32>
    %5 = vector.broadcast %4 : vector<1x96xf32> to vector<8x96xf32>
    %6 = arith.addf %3, %5 : vector<8x96xf32>
    %7 = vector.extract_strided_slice %6 {offsets = [0, 0], sizes = [8, 8], strides = [1, 1]} : vector<8x96xf32> to vector<8x8xf32>
    %c0_6 = arith.constant 0 : index
    %c0_7 = arith.constant 0 : index
    %c0_8 = arith.constant 0 : index
    %c0_9 = arith.constant 0 : index
    %8 = vector.load %arg5[%c0_6, %c0_7, %c0_8, %c0_9] : memref<1x4x8x8xf32, #tpu.memory_space<vmem>>, vector<1x1x8x8xf32>
    %9 = vector.shape_cast %8 : vector<1x1x8x8xf32> to vector<8x8xf32>
    %10 = vector.shape_cast %7 : vector<8x8xf32> to vector<1x1x8x8xf32>
    tpu.vector_store %arg5[%c0_6, %c0_7, %c0_8, %c0_9], %10 {strides = array<i32>} : memref<1x4x8x8xf32, #tpu.memory_space<vmem>>, vector<1x1x8x8xf32>,
    %11 = vector.extract_strided_slice %6 {offsets = [0, 32], sizes = [8, 8], strides = [1, 1]} : vector<8x96xf32> to vector<8x8xf32>
    %c0_10 = arith.constant 0 : index
    %c0_11 = arith.constant 0 : index
    %c0_12 = arith.constant 0 : index
    %c0_13 = arith.constant 0 : index
    %12 = vector.load %arg6[%c0_10, %c0_11, %c0_12, %c0_13] : memref<1x4x8x8xf32, #tpu.memory_space<vmem>>, vector<1x1x8x8xf32>
    %13 = vector.shape_cast %12 : vector<1x1x8x8xf32> to vector<8x8xf32>
    %14 = vector.shape_cast %11 : vector<8x8xf32> to vector<1x1x8x8xf32>
    tpu.vector_store %arg6[%c0_10, %c0_11, %c0_12, %c0_13], %14 {strides = array<i32>} : memref<1x4x8x8xf32, #tpu.memory_space<vmem>>, vector<1x1x8x8xf32>,
    %15 = vector.extract_strided_slice %6 {offsets = [0, 64], sizes = [8, 8], strides = [1, 1]} : vector<8x96xf32> to vector<8x8xf32>
    %c0_14 = arith.constant 0 : index
    %c0_15 = arith.constant 0 : index
    %c0_16 = arith.constant 0 : index
    %c0_17 = arith.constant 0 : index
    %16 = vector.load %arg7[%c0_14, %c0_15, %c0_16, %c0_17] : memref<1x4x8x8xf32, #tpu.memory_space<vmem>>, vector<1x1x8x8xf32>
    %17 = vector.shape_cast %16 : vector<1x1x8x8xf32> to vector<8x8xf32>
    %18 = vector.shape_cast %15 : vector<8x8xf32> to vector<1x1x8x8xf32>
    tpu.vector_store %arg7[%c0_14, %c0_15, %c0_16, %c0_17], %18 {strides = array<i32>} : memref<1x4x8x8xf32, #tpu.memory_space<vmem>>, vector<1x1x8x8xf32>,
    %19 = vector.extract_strided_slice %6 {offsets = [0, 8], sizes = [8, 8], strides = [1, 1]} : vector<8x96xf32> to vector<8x8xf32>
    %c0_18 = arith.constant 0 : index
    %c1 = arith.constant 1 : index
    %c0_19 = arith.constant 0 : index
    %c0_20 = arith.constant 0 : index
    %20 = vector.load %arg5[%c0_18, %c1, %c0_19, %c0_20] : memref<1x4x8x8xf32, #tpu.memory_space<vmem>>, vector<1x1x8x8xf32>
    %21 = vector.shape_cast %20 : vector<1x1x8x8xf32> to vector<8x8xf32>
    %22 = vector.shape_cast %19 : vector<8x8xf32> to vector<1x1x8x8xf32>
    tpu.vector_store %arg5[%c0_18, %c1, %c0_19, %c0_20], %22 {strides = array<i32>} : memref<1x4x8x8xf32, #tpu.memory_space<vmem>>, vector<1x1x8x8xf32>,
    %23 = vector.extract_strided_slice %6 {offsets = [0, 40], sizes = [8, 8], strides = [1, 1]} : vector<8x96xf32> to vector<8x8xf32>
    %c0_21 = arith.constant 0 : index
    %c1_22 = arith.constant 1 : index
    %c0_23 = arith.constant 0 : index
    %c0_24 = arith.constant 0 : index
    %24 = vector.load %arg6[%c0_21, %c1_22, %c0_23, %c0_24] : memref<1x4x8x8xf32, #tpu.memory_space<vmem>>, vector<1x1x8x8xf32>
    %25 = vector.shape_cast %24 : vector<1x1x8x8xf32> to vector<8x8xf32>
    %26 = vector.shape_cast %23 : vector<8x8xf32> to vector<1x1x8x8xf32>
    tpu.vector_store %arg6[%c0_21, %c1_22, %c0_23, %c0_24], %26 {strides = array<i32>} : memref<1x4x8x8xf32, #tpu.memory_space<vmem>>, vector<1x1x8x8xf32>,
    %27 = vector.extract_strided_slice %6 {offsets = [0, 72], sizes = [8, 8], strides = [1, 1]} : vector<8x96xf32> to vector<8x8xf32>
    %c0_25 = arith.constant 0 : index
    %c1_26 = arith.constant 1 : index
    %c0_27 = arith.constant 0 : index
    %c0_28 = arith.constant 0 : index
    %28 = vector.load %arg7[%c0_25, %c1_26, %c0_27, %c0_28] : memref<1x4x8x8xf32, #tpu.memory_space<vmem>>, vector<1x1x8x8xf32>
    %29 = vector.shape_cast %28 : vector<1x1x8x8xf32> to vector<8x8xf32>
    %30 = vector.shape_cast %27 : vector<8x8xf32> to vector<1x1x8x8xf32>
    tpu.vector_store %arg7[%c0_25, %c1_26, %c0_27, %c0_28], %30 {strides = array<i32>} : memref<1x4x8x8xf32, #tpu.memory_space<vmem>>, vector<1x1x8x8xf32>,
    %31 = vector.extract_strided_slice %6 {offsets = [0, 16], sizes = [8, 8], strides = [1, 1]} : vector<8x96xf32> to vector<8x8xf32>
    %c0_29 = arith.constant 0 : index
    %c2 = arith.constant 2 : index
    %c0_30 = arith.constant 0 : index
    %c0_31 = arith.constant 0 : index
    %32 = vector.load %arg5[%c0_29, %c2, %c0_30, %c0_31] : memref<1x4x8x8xf32, #tpu.memory_space<vmem>>, vector<1x1x8x8xf32>
    %33 = vector.shape_cast %32 : vector<1x1x8x8xf32> to vector<8x8xf32>
    %34 = vector.shape_cast %31 : vector<8x8xf32> to vector<1x1x8x8xf32>
    tpu.vector_store %arg5[%c0_29, %c2, %c0_30, %c0_31], %34 {strides = array<i32>} : memref<1x4x8x8xf32, #tpu.memory_space<vmem>>, vector<1x1x8x8xf32>,
    %35 = vector.extract_strided_slice %6 {offsets = [0, 48], sizes = [8, 8], strides = [1, 1]} : vector<8x96xf32> to vector<8x8xf32>
    %c0_32 = arith.constant 0 : index
    %c2_33 = arith.constant 2 : index
    %c0_34 = arith.constant 0 : index
    %c0_35 = arith.constant 0 : index
    %36 = vector.load %arg6[%c0_32, %c2_33, %c0_34, %c0_35] : memref<1x4x8x8xf32, #tpu.memory_space<vmem>>, vector<1x1x8x8xf32>
    %37 = vector.shape_cast %36 : vector<1x1x8x8xf32> to vector<8x8xf32>
    %38 = vector.shape_cast %35 : vector<8x8xf32> to vector<1x1x8x8xf32>
    tpu.vector_store %arg6[%c0_32, %c2_33, %c0_34, %c0_35], %38 {strides = array<i32>} : memref<1x4x8x8xf32, #tpu.memory_space<vmem>>, vector<1x1x8x8xf32>,
    %39 = vector.extract_strided_slice %6 {offsets = [0, 80], sizes = [8, 8], strides = [1, 1]} : vector<8x96xf32> to vector<8x8xf32>
    %c0_36 = arith.constant 0 : index
    %c2_37 = arith.constant 2 : index
    %c0_38 = arith.constant 0 : index
    %c0_39 = arith.constant 0 : index
    %40 = vector.load %arg7[%c0_36, %c2_37, %c0_38, %c0_39] : memref<1x4x8x8xf32, #tpu.memory_space<vmem>>, vector<1x1x8x8xf32>
    %41 = vector.shape_cast %40 : vector<1x1x8x8xf32> to vector<8x8xf32>
    %42 = vector.shape_cast %39 : vector<8x8xf32> to vector<1x1x8x8xf32>
    tpu.vector_store %arg7[%c0_36, %c2_37, %c0_38, %c0_39], %42 {strides = array<i32>} : memref<1x4x8x8xf32, #tpu.memory_space<vmem>>, vector<1x1x8x8xf32>,
    %43 = vector.extract_strided_slice %6 {offsets = [0, 24], sizes = [8, 8], strides = [1, 1]} : vector<8x96xf32> to vector<8x8xf32>
    %c0_40 = arith.constant 0 : index
    %c3 = arith.constant 3 : index
    %c0_41 = arith.constant 0 : index
    %c0_42 = arith.constant 0 : index
    %44 = vector.load %arg5[%c0_40, %c3, %c0_41, %c0_42] : memref<1x4x8x8xf32, #tpu.memory_space<vmem>>, vector<1x1x8x8xf32>
    %45 = vector.shape_cast %44 : vector<1x1x8x8xf32> to vector<8x8xf32>
    %46 = vector.shape_cast %43 : vector<8x8xf32> to vector<1x1x8x8xf32>
    tpu.vector_store %arg5[%c0_40, %c3, %c0_41, %c0_42], %46 {strides = array<i32>} : memref<1x4x8x8xf32, #tpu.memory_space<vmem>>, vector<1x1x8x8xf32>,
    %47 = vector.extract_strided_slice %6 {offsets = [0, 56], sizes = [8, 8], strides = [1, 1]} : vector<8x96xf32> to vector<8x8xf32>
    %c0_43 = arith.constant 0 : index
    %c3_44 = arith.constant 3 : index
    %c0_45 = arith.constant 0 : index
    %c0_46 = arith.constant 0 : index
    %48 = vector.load %arg6[%c0_43, %c3_44, %c0_45, %c0_46] : memref<1x4x8x8xf32, #tpu.memory_space<vmem>>, vector<1x1x8x8xf32>
    %49 = vector.shape_cast %48 : vector<1x1x8x8xf32> to vector<8x8xf32>
    %50 = vector.shape_cast %47 : vector<8x8xf32> to vector<1x1x8x8xf32>
    tpu.vector_store %arg6[%c0_43, %c3_44, %c0_45, %c0_46], %50 {strides = array<i32>} : memref<1x4x8x8xf32, #tpu.memory_space<vmem>>, vector<1x1x8x8xf32>,
    %51 = vector.extract_strided_slice %6 {offsets = [0, 88], sizes = [8, 8], strides = [1, 1]} : vector<8x96xf32> to vector<8x8xf32>
    %c0_47 = arith.constant 0 : index
    %c3_48 = arith.constant 3 : index
    %c0_49 = arith.constant 0 : index
    %c0_50 = arith.constant 0 : index
    %52 = vector.load %arg7[%c0_47, %c3_48, %c0_49, %c0_50] : memref<1x4x8x8xf32, #tpu.memory_space<vmem>>, vector<1x1x8x8xf32>
    %53 = vector.shape_cast %52 : vector<1x1x8x8xf32> to vector<8x8xf32>
    %54 = vector.shape_cast %51 : vector<8x8xf32> to vector<1x1x8x8xf32>
    tpu.vector_store %arg7[%c0_47, %c3_48, %c0_49, %c0_50], %54 {strides = array<i32>} : memref<1x4x8x8xf32, #tpu.memory_space<vmem>>, vector<1x1x8x8xf32>,
    return
  }
  func.func @transform_0(%arg0: i32, %arg1: i32) -> (i32, i32, i32) {
    %c0_i32 = arith.constant 0 : i32
    %c0_i32_0 = arith.constant 0 : i32
    return %arg0, %arg1, %c0_i32 : i32, i32, i32
  }
  func.func @transform_1(%arg0: i32, %arg1: i32) -> (i32, i32) {
    %c0_i32 = arith.constant 0 : i32
    %c0_i32_0 = arith.constant 0 : i32
    %c0_i32_1 = arith.constant 0 : i32
    return %c0_i32, %c0_i32_0 : i32, i32
  }
  func.func @transform_2(%arg0: i32, %arg1: i32) -> (i32, i32) {
    %c0_i32 = arith.constant 0 : i32
    %c0_i32_0 = arith.constant 0 : i32
    %c0_i32_1 = arith.constant 0 : i32
    return %c0_i32, %c0_i32_0 : i32, i32
  }
  func.func @transform_3(%arg0: i32, %arg1: i32) -> (i32, i32, i32, i32) {
    %c0_i32 = arith.constant 0 : i32
    %c0_i32_0 = arith.constant 0 : i32
    %c0_i32_1 = arith.constant 0 : i32
    return %arg0, %c0_i32, %arg1, %c0_i32_0 : i32, i32, i32, i32
  }
  func.func @transform_4(%arg0: i32, %arg1: i32) -> (i32, i32, i32, i32) {
    %c0_i32 = arith.constant 0 : i32
    %c0_i32_0 = arith.constant 0 : i32
    %c0_i32_1 = arith.constant 0 : i32
    return %arg0, %c0_i32, %arg1, %c0_i32_0 : i32, i32, i32, i32
  }
  func.func @transform_5(%arg0: i32, %arg1: i32) -> (i32, i32, i32, i32) {
    %c0_i32 = arith.constant 0 : i32
    %c0_i32_0 = arith.constant 0 : i32
    %c0_i32_1 = arith.constant 0 : i32
    return %arg0, %c0_i32, %arg1, %c0_i32_0 : i32, i32, i32, i32
  }
}

</mosaic_0001>

<bundles_post_ra>
// kernel: tpu_custom_call.1
= control target key start
LH: loop header
LB: loop body
LE: loop exit
PB: predicated region body
PF: predicated region fallthrough
CT: control target
= control target key end

     0   :  { %s1345_s0 = inlined_call_operand.hbm [shape: f32[2,8,32], index: 0, kind: input, shape index: {}]   ;;  %s1346_s1 = inlined_call_operand.hbm [shape: f32[32,96], index: 1, kind: input, shape index: {}]   ;;  %s1347_s2 = inlined_call_operand.vmem [shape: f32[1,96], index: 2, kind: input, shape index: {}]   ;;  %s1348_s3 = inlined_call_operand.hbm [shape: f32[2,4,8,8], index: 3, kind: output, shape index: {0}]   ;;  %s1349_s4 = inlined_call_operand.hbm [shape: f32[2,4,8,8], index: 4, kind: output, shape index: {1}]   ;;  %s1350_s5 = inlined_call_operand.hbm [shape: f32[2,4,8,8], index: 5, kind: output, shape index: {2}]  }
   0x1   :  { %1354 = sst [smem:[#allocation16_spill]] %s1346_s1 }
   0x2   :  { %11 = vsyncpa [#allocation3], 0 }
   0x3   :  { %13 = vsyncpa [#allocation3 + $0x1], 0 }
   0x4   :  { %14 = vsyncpa [#allocation6], 0 }
   0x5   :  { %15 = vsyncpa [#allocation4], 0 }
   0x6   :  { %17 = vsyncpa [#allocation4 + $0x1], 0 }
   0x7   :  { %18 = vsyncpa [#allocation9], 0 }
   0x8   :  { %20 = vsyncpa [#allocation9 + $0x1], 0  ;;  %s1056_s18 = smov 0   ;;  %s1058_s19 = smov 0  }
   0x9   :  { %s1060_s20 = smov 0   ;;  %s1062_s21 = smov 0  }
   0xa   :  { %s1064_s22 = smov 0   ;;  %s1066_s23 = smov 0  }
   0xb LB: > { %s1087_s24 = sadd.s32 4294967295, %s1002_s23   ;;  %s1351_s25 = sadd.s32 4294967294, %s1002_s23   ;;  %s1002_s23 = sphi %s1066_s23, %s26_s23   ;;  %s998_s22 = sphi %s1064_s22, %s1375_s22   ;;  %s994_s21 = sphi %s1062_s21, %s1374_s21   ;;  %s990_s20 = sphi %s1060_s20, %s1373_s20   ;;  %s986_s19 = sphi %s1058_s19, %s1372_s19   ;;  %s982_s18 = sphi %s1056_s18, %s1371_s18  }
   0xc   : > { %p60_p0 = scmp.ne.s32.totalorder %s986_s19, %s982_s18  ;;  %p1353_p1 = scmp.eq.s32.totalorder %s1087_s24, 0 }
   0xd   : > { %p134_p3 = scmp.eq.s32.totalorder %s1351_s25, 1  ;;  %p656_p5 = scmp.ge.s32.totalorder %s1002_s23, 1 }
   0xe   : > { %p1098_p4 = por %p1353_p1, %p60_p0  ;;  %p197_p7 = scmp.lt.s32.totalorder %s1002_s23, 3 }
   0xf   : > { %p1103_p6 = por %p134_p3, %p60_p0  ;;  %s1004_s29 = smov [#allocation5]  }
  0x10   : > { %p1108_p8 = pnand %p656_p5, %p197_p7  ;;  %s209_s30 = sshll.u32 %s1004_s29, 4  ;;  %s210_s30 = int_to_ptr.vmem [resolvable:$true] %s209_s30 }
  0x11   : > { %s1356_s27 = scalar_select %p1103_p6, 1, 0 }
  0x12   : > { %p720_p9 = pneg %p1108_p8  ;;  %s38_s7 = sadd.s32 1, %s998_s22 }
  0x13   : > { %s819_s8 = scalar_lea.vmem %s210_s30, 512  ;;  %p827_p5 = scmp.lt.s32.totalorder %s210_s30, %s210_s30 }
  0x14   : > { %p1117_p11 = pnand %p720_p9, %p1353_p1  ;;  %p820_p13 = scmp.ne.s32.totalorder %s210_s30, %s819_s8 }
  0x15   : > { %p828_p7 = scmp.lt.s32.totalorder %s819_s8, %s819_s8 }
  0x16   : > { %p810_p12 = pneg %p1117_p11 }
  0x17   : > { %p829_p2 = por %p828_p7, %p827_p5 }
  0x18   : > { %p822_p0 = pnand %p820_p13, %p810_p12 }
  0x1a   : > { %p823_p3 = pneg %p822_p0 }
  0x1c   : > { %p830_p6 = pnand %p829_p2, %p823_p3 }
  0x1e   : > { %833 = shalt.err (!%p830_p6)
}
  0x1f   : > { %s1005_s9 = smov 128   ;;  %s1006_s10 = smov 8  }
  0x20   : > { %s1359_s1 = sld [smem:[#allocation16_spill]]  ;;  %p40_p2 = scmp.ge.s32.totalorder %s38_s7, 2 }
  0x21   : > { %s47_s13 = sadd.s32 1, %s990_s20  ;;  %p54_p6 = scmp.ne.s32.totalorder %s990_s20, %s986_s19 }
  0x22   : > { %p55_p9 = scmp.eq.s32.totalorder %s1002_s23, 0  ;;  %s1377_s7 = smov (%p40_p2, %s38_s7), 0 }
  0x23   : > { %1360 = sst [smem:[#allocation15_spill]] %s1377_s7  ;;  %p1362_p13 = scmp.eq.s32.totalorder %s1087_s24, 1 }
  0x24   : > { %p1135_p12 = por %p55_p9, %p54_p6  ;;  %s42_s16 = ssub.s32 %s998_s22, %s1377_s7 }
  0x25   : > { %p1141_p0 = por %p1362_p13, %p54_p6  ;;  %p739_p3 = scmp.lt.s32.totalorder %s1002_s23, 2 }
  0x26   : > { %723 = dma.hbm_to_vmem [thread:$0]  (!%p1117_p11), %s1359_s1, 512, %s210_s30, [#allocation6], %s1005_s9, %s1005_s9, %s1006_s10  }
  0x27   : > { %p45_p11 = scmp.eq.s32.totalorder %s42_s16, 0  ;;  %s226_s17 = sand.u32 1, %s990_s20  }
  0x28   : > { %s659_s29 = sshll.u32 %s226_s17, 3  ;;  %s660_s6 = sshll.u32 %s998_s22, 7 }
  0x29   : > { %s1150_s30 = scalar_select %p45_p11, %s990_s20, %s47_s13  }
  0x2a   : > { %s236_s10 = scalar_lea.hbm %s1345_s0, %s660_s6  ;;  %s230_s11 = scalar_lea.vmem [#allocation2], %s659_s29 }
  0x2b   : > { %s238_s12 = sshll.u32 %s230_s11, 4  ;;  %p1158_p5 = pnand %p739_p3, %p1135_p12  ;;  %s239_s12 = int_to_ptr.vmem [resolvable:$true] %s238_s12 }
  0x2c   : > { %s227_s1 = scalar_lea.sflag [#allocation3], %s226_s17  ;;  %s847_s16 = scalar_lea.vmem %s239_s12, 128 }
  0x2d   : > { %p836_p7 = pneg %p1158_p5  ;;  %p848_p2 = scmp.ne.s32.totalorder %s239_s12, %s847_s16 }
  0x2e   : > { %s1007_s13 = smov [#allocation2]  }
  0x2f   : > { %p850_p6 = pnand %p848_p2, %p836_p7  ;;  %s852_s7 = sshll.u32 %s1007_s13, 4  ;;  %s853_s7 = int_to_ptr.vmem [resolvable:$false] %s852_s7 }
  0x30   : > { %s854_s6 = scalar_lea.vmem %s853_s7, 256  ;;  %p855_p13 = scmp.lt.s32.totalorder %s239_s12, %s853_s7 }
  0x31   : > { %p851_p9 = pneg %p850_p6  ;;  %p856_p11 = scmp.lt.s32.totalorder %s854_s6, %s847_s16 }
  0x33   : > { %p857_p10 = por %p856_p11, %p855_p13 }
  0x35   : > { %p858_p1 = pnand %p857_p10, %p851_p9 }
  0x37   : > { %861 = shalt.err (!%p858_p1)
}
  0x38   : > { %727 = dma.hbm_to_vmem [thread:$0]  (!%p1158_p5), %s236_s10, 128, %s239_s12, %s227_s1  }
  0x39   : > { %247 = sbr.rel (%p1108_p8) target bundleno = 449 (0x1c1), region = 32  ;;  %s1169_s14 = sand.u32 (!%p1108_p8), 1, %s986_s19  }
  0x3a   : > { %s662_s17 = sshll.u32 (!%p1108_p8), %s1169_s14, 3  ;;  %s250_s29 = scalar_lea.sflag (!%p1108_p8), [#allocation3], %s1169_s14 }
  0x3b   : > { %s253_s8 = scalar_lea.vmem (!%p1108_p8), [#allocation2], %s662_s17 }
  0x3e   : > { %965 = dma.done.wait (%p1098_p4), %s250_s29, 128  }
  0x3f   : > { %967 = vsyncadd (%p1098_p4), %s250_s29, 4294967168  ;;  %p1365_p1 = scmp.eq.s32.totalorder %s1087_s24, 0 }
  0x41   : > { %969 = dma.done.wait (%p1365_p1), [#allocation6], 512   ;;  %p1366_p10 = pmov %p1365_p1 }
  0x42   : > { %v1008_v0 = vmov 0.0   ;;  %vm1009_vm0 = vmmov 0   ;;  %v298_v1 = vld [vmem:[#allocation5 + $0x18] sm:$0xff]  ;;  %v297_v2 = vld [vmem:[#allocation5 + $0x10] sm:$0xff]  ;;  %v296_v3 = vld [vmem:[#allocation5 + $0x8] sm:$0xff]  ;;  %vm306_vm1 = vcmask 261120  }
  0x43   : > { %971 = vsyncadd (%p1366_p10), [#allocation6], 4294966784  ;;  %697 = vmatprep.subr.mxu0 %v1008_v0  ;;  %705 = vmatprep.mubr.msk.f32.mxu0 %vm1009_vm0, %v1008_v0  ;;  %v295_v4 = vld [vmem:[#allocation5] sm:$0xff]  ;;  %v294_v5 = vld [vmem:[%s253_s8] sm:$0xff]  ;;  %s1182_s1 = sshll.u32 %s1169_s14, 5  ;;  %vm380_vm2 = vcmask 64512  }
  0x44   : > { %698 = vmatpush3.msra.mxu0 %v298_v1  ;;  %v667_v6 = vld [vmem:[%s1347_s2] ss:$0 sm:$0xff]  ;;  %s1010_s28 = smov 80   ;;  %s1011_s7 = smov 96  }
  0x45   : > { %699 = vmatprep.subr.mxu0 %v1008_v0  ;;  %s1188_s9 = scalar_lea.vmem [#allocation7], %s1182_s1  ;;  %s1012_s10 = smov 72  }
  0x46   : > { %700 = vmatpush3.msra.mxu0 %v297_v2  ;;  %s1013_s11 = smov 88   ;;  %s1014_s12 = smov 120  }
  0x47   : > { %701 = vmatprep.subr.mxu0 %v1008_v0  ;;  %s1015_s16 = smov 64   ;;  %s1016_s13 = smov 112  }
  0x48   : > { %702 = vmatpush3.msra.mxu0 %v296_v3  ;;  %s1017_s6 = smov 56   ;;  %s1018_s17 = smov 104  }
  0x49   : > { %703 = vmatprep.subr.mxu0 %v1008_v0  ;;  %s1019_s29 = smov 48   ;;  %s1020_s8 = smov 40  }
  0x4a   : > { %704 = vmatpush3.msra.mxu0 %v295_v4  ;;  %s286_s25 = scalar_lea.vmem [#allocation8], %s1182_s1 }
  0x4b   : > { %706 = vmatmul.mubr.msk.f32.vlgmr.msra.gmra.mxu0 %vm306_vm1, %v294_v5  ;;  %s478_s26 = sshll.u32 %s286_s25, 4  ;;  %s1197_s26 = int_to_ptr.vmem [resolvable:$true] %s478_s26 }
 0x10b   : > { %v376_v7 = vpop.f32.mrf.mxu0 }
 0x10c   : > { %v377_v8 = vadd.f32 %v667_v6, %v376_v7 }
 0x10d   : > { %v707_v9 = vpop.f32.mrf.mxu0 }
 0x10e   : > { %411 = vrot.lane.b32.xlu1 %v377_v8, %s1010_s28  ;;  %383 = vrot.lane.b32.xlu0 %v377_v8, %s1011_s7  ;;  %381 = vst.msk [vmem:[%s1188_s9] sm:$0xff] %vm380_vm2, %v377_v8  ;;  %s441_s28 = sand.u32 1, %s1087_s24   ;;  %s1195_s7 = sshll.u32 %s994_s21, 9 }
 0x10f   : > { %s1209_s21 = scalar_lea.sflag [#allocation9], %s441_s28  ;;  %s862_s24 = scalar_lea.vmem %s1197_s26, 512 }
 0x110   : > { %p863_p4 = scmp.ne.s32.totalorder %s1197_s26, %s862_s24 }
 0x112   : > { %426 = vrot.lane.b32.xlu1 %v377_v8, %s1012_s10  ;;  %396 = vrot.lane.b32.xlu0 %v377_v8, %s1013_s11  ;;  %p864_p8 = pnand %p863_p4, %p1141_p0 }
 0x114   : > { %p865_p12 = pneg %p864_p8 }
 0x116   : > { %391 = vrot.lane.b32.xlu1 %v377_v8, %s1014_s12  ;;  %387 = vrot.lane.b32.xlu0 %v377_v8, %s1015_s16  ;;  %s1205_s12 = scalar_lea.hbm %s1349_s4, %s1195_s7  ;;  %s1021_s16 = smov [#allocation8]  }
 0x11a   : > { %406 = vrot.lane.b32.xlu1 %v377_v8, %s1016_s13  ;;  %401 = vrot.lane.b32.xlu0 %v377_v8, %s1017_s6  ;;  %s866_s13 = sshll.u32 %s1021_s16, 4  ;;  %s867_s13 = int_to_ptr.vmem [resolvable:$false] %s866_s13 }
 0x11b   : > { %s868_s6 = scalar_lea.vmem %s867_s13, 1024  ;;  %p869_p3 = scmp.lt.s32.totalorder %s1197_s26, %s867_s13 }
 0x11c   : > { %p870_p5 = scmp.lt.s32.totalorder %s868_s6, %s862_s24 }
 0x11e   : > { %421 = vrot.lane.b32.xlu1 %v377_v8, %s1018_s17  ;;  %416 = vrot.lane.b32.xlu0 %v377_v8, %s1019_s29  ;;  %p871_p7 = por %p870_p5, %p869_p3 }
 0x120   : > { %p872_p2 = pnand %p871_p7, %p865_p12 }
 0x122   : > { %431 = vrot.lane.b32.xlu0 %v377_v8, %s1020_s8 }
 0x180   : > { %v412_v10 = vpop.permute.xlu1 %411  ;;  %v384_v11 = vpop.permute.xlu0 %383 }
 0x181   : > { %673 = vst.msk [vmem:[%s286_s25 + $0x10] sm:$0xff] %vm380_vm2, %v412_v10  ;;  %386 = vst.msk [vmem:[%s286_s25] sm:$0xff] %vm380_vm2, %v384_v11 }
 0x184   : > { %v427_v12 = vpop.permute.xlu1 %426  ;;  %v397_v13 = vpop.permute.xlu0 %396 }
 0x185   : > { %676 = vst.msk [vmem:[%s286_s25 + $0x18] sm:$0xff] %vm380_vm2, %v427_v12  ;;  %670 = vst.msk [vmem:[%s286_s25 + $0x8] sm:$0xff] %vm380_vm2, %v397_v13 }
 0x186   : > { %875 = shalt.err (!%p872_p2)
}
 0x187   : > { %s876_s17 = scalar_lea.hbm %s1205_s12, 512  ;;  %s880_s25 = scalar_lea.hbm %s1349_s4, 1024 }
 0x188   : > { %p877_p6 = scmp.ne.s32.totalorder %s1205_s12, %s876_s17  ;;  %p881_p11 = scmp.lt.s32.totalorder %s1205_s12, %s1349_s4 }
 0x189   : > { %p882_p1 = scmp.lt.s32.totalorder %s880_s25, %s876_s17 }
 0x18a   : > { %p878_p9 = pnand %p877_p6, %p1141_p0 }
 0x18b   : > { %p883_p10 = por %p882_p1, %p881_p11 }
 0x18c   : > { %p879_p13 = pneg %p878_p9 }
 0x18e   : > { %p884_p4 = pnand %p883_p10, %p879_p13 }
 0x190   : > { %887 = shalt.err (!%p884_p4)
}
 0x191   : > { %s1022_s11 = smov 128   ;;  %s1023_s24 = smov 8   ;;  %v392_v14 = vpop.permute.xlu1 %391  ;;  %v388_v15 = vpop.permute.xlu0 %387 }
 0x192   : > { %715 = dma.vmem_to_hbm [thread:$0]  (%p1141_p0), %s1197_s26, 512, %s1205_s12, %s1209_s21, %s1022_s11, %s1022_s11, %s1023_s24  }
 0x193   : > { %669 = vst.msk [vmem:[%s1188_s9 + $0x8] sm:$0xff] %vm380_vm2, %v392_v14  ;;  %s1238_s16 = scalar_lea.vmem [#allocation10], %s1182_s1  ;;  %s461_s13 = sshll.u32 %s1188_s9, 4  ;;  %s1247_s13 = int_to_ptr.vmem [resolvable:$true] %s461_s13 }
 0x194   : > { %390 = vst.msk [vmem:[%s1238_s16] sm:$0xff] %vm380_vm2, %v388_v15  ;;  %s1253_s1 = scalar_lea.hbm %s1348_s3, %s1195_s7  ;;  %s495_s6 = sshll.u32 %s1238_s16, 4  ;;  %s1286_s6 = int_to_ptr.vmem [resolvable:$true] %s495_s6 }
 0x195   : > { %v407_v16 = vpop.permute.xlu1 %406  ;;  %v402_v17 = vpop.permute.xlu0 %401  ;;  %s437_s17 = scalar_lea.sflag [#allocation4], %s1169_s14  ;;  %s888_s29 = scalar_lea.vmem %s1247_s13, 512 }
 0x196   : > { %672 = vst.msk [vmem:[%s1188_s9 + $0x10] sm:$0xff] %vm380_vm2, %v407_v16  ;;  %671 = vst.msk [vmem:[%s1238_s16 + $0x8] sm:$0xff] %vm380_vm2, %v402_v17  ;;  %p889_p8 = scmp.ne.s32.totalorder %s1247_s13, %s888_s29  ;;  %s1024_s8 = smov [#allocation7]  }
 0x197   : > { %s892_s25 = sshll.u32 %s1024_s8, 4  ;;  %s893_s25 = int_to_ptr.vmem [resolvable:$false] %s892_s25 }
 0x198   : > { %p890_p12 = pnand %p889_p8, %p1141_p0  ;;  %s894_s28 = scalar_lea.vmem %s893_s25, 1024 }
 0x199   : > { %v422_v18 = vpop.permute.xlu1 %421  ;;  %v417_v19 = vpop.permute.xlu0 %416  ;;  %p895_p5 = scmp.lt.s32.totalorder %s1247_s13, %s893_s25  ;;  %p896_p7 = scmp.lt.s32.totalorder %s894_s28, %s888_s29 }
 0x19a   : > { %675 = vst.msk [vmem:[%s1188_s9 + $0x18] sm:$0xff] %vm380_vm2, %v422_v18  ;;  %674 = vst.msk [vmem:[%s1238_s16 + $0x10] sm:$0xff] %vm380_vm2, %v417_v19  ;;  %p891_p3 = pneg %p890_p12 }
 0x19b   : > { %p897_p2 = por %p896_p7, %p895_p5 }
 0x19d   : > { %p898_p6 = pnand %p897_p2, %p891_p3 }
 0x19f   : > { %901 = shalt.err (!%p898_p6)
}
 0x1a0   : > { %s902_s9 = scalar_lea.hbm %s1253_s1, 512  ;;  %s906_s26 = scalar_lea.hbm %s1348_s3, 1024 }
 0x1a1   : > { %p903_p9 = scmp.ne.s32.totalorder %s1253_s1, %s902_s9  ;;  %p907_p1 = scmp.lt.s32.totalorder %s1253_s1, %s1348_s3 }
 0x1a2   : > { %p908_p10 = scmp.lt.s32.totalorder %s906_s26, %s902_s9 }
 0x1a3   : > { %p904_p13 = pnand %p903_p9, %p1141_p0 }
 0x1a4   : > { %p909_p4 = por %p908_p10, %p907_p1 }
 0x1a5   : > { %p905_p11 = pneg %p904_p13 }
 0x1a7   : > { %p910_p8 = pnand %p909_p4, %p905_p11 }
 0x1a9   : > { %913 = shalt.err (!%p910_p8)
}
 0x1aa   : > { %714 = dma.vmem_to_hbm [thread:$0]  (%p1141_p0), %s1247_s13, 512, %s1253_s1, %s437_s17, %s1022_s11, %s1022_s11, %s1023_s24   ;;  %v432_v20 = vpop.permute.xlu0 %431 }
 0x1ab   : > { %s1292_s28 = scalar_lea.hbm %s1350_s5, %s1195_s7  ;;  %677 = vst.msk [vmem:[%s1238_s16 + $0x18] sm:$0xff] %vm380_vm2, %v432_v20  ;;  %s914_s9 = scalar_lea.vmem %s1286_s6, 512 }
 0x1ac   : > { %p915_p12 = scmp.ne.s32.totalorder %s1286_s6, %s914_s9  ;;  %s1025_s13 = smov [#allocation10]  }
 0x1ad   : > { %s918_s1 = sshll.u32 %s1025_s13, 4  ;;  %s919_s1 = int_to_ptr.vmem [resolvable:$false] %s918_s1 }
 0x1ae   : > { %p916_p3 = pnand %p915_p12, %p1141_p0  ;;  %s920_s17 = scalar_lea.vmem %s919_s1, 1024 }
 0x1af   : > { %p921_p7 = scmp.lt.s32.totalorder %s1286_s6, %s919_s1  ;;  %p922_p2 = scmp.lt.s32.totalorder %s920_s17, %s914_s9 }
 0x1b0   : > { %p917_p5 = pneg %p916_p3 }
 0x1b1   : > { %p923_p6 = por %p922_p2, %p921_p7 }
 0x1b3   : > { %p924_p9 = pnand %p923_p6, %p917_p5 }
 0x1b5   : > { %927 = shalt.err (!%p924_p9)
}
 0x1b6   : > { %s928_s7 = scalar_lea.hbm %s1292_s28, 512  ;;  %s932_s10 = scalar_lea.hbm %s1350_s5, 1024 }
 0x1b7   : > { %p929_p13 = scmp.ne.s32.totalorder %s1292_s28, %s928_s7  ;;  %p933_p10 = scmp.lt.s32.totalorder %s1292_s28, %s1350_s5 }
 0x1b8   : > { %p934_p4 = scmp.lt.s32.totalorder %s932_s10, %s928_s7 }
 0x1b9   : > { %p930_p11 = pnand %p929_p13, %p1141_p0 }
 0x1ba   : > { %p935_p8 = por %p934_p4, %p933_p10 }
 0x1bb   : > { %p931_p1 = pneg %p930_p11 }
 0x1bd   : > { %p936_p12 = pnand %p935_p8, %p931_p1 }
 0x1bf   : > { %939 = shalt.err (!%p936_p12)
}
 0x1c0   : > { %716 = dma.vmem_to_hbm [thread:$0]  (%p1141_p0), %s1286_s6, 512, %s1292_s28, %s1209_s21, %s1022_s11, %s1022_s11, %s1023_s24  }
 0x1c1 PF: > { %s510_s8 = sand.u32 1, %s982_s18   ;;  %p1367_p3 = scmp.ne.s32.totalorder %s1356_s27, 0 }
 0x1c2   : > { %p1368_p5 = scmp.ge.s32.totalorder %s1002_s23, 2  ;;  %s511_s29 = scalar_lea.sflag [#allocation4], %s510_s8 }
 0x1c4   : > { %p729_p7 = pnand %p1368_p5, %p1367_p3 }
 0x1c6   : > { %p730_p2 = pneg %p729_p7 }
 0x1c8   : > { %973 = dma.done.wait (%p730_p2), %s511_s29, 512  }
 0x1c9   : > { %975 = vsyncadd (%p730_p2), %s511_s29, 4294966784  ;;  %s1369_s15 = sadd.s32 4294967294, %s1002_s23  }
 0x1ca   : > { %s519_s25 = sand.u32 1, %s1369_s15  }
 0x1cb   : > { %s520_s9 = scalar_lea.sflag [#allocation9], %s519_s25 }
 0x1cc   : > { %977 = dma.done.wait (%p730_p2), %s520_s9, 1024  }
 0x1cd   : > { %979 = vsyncadd (%p730_p2), %s520_s9, 4294966272  ;;  %s26_s23 = sadd.s32 1, %s1002_s23   ;;  %s1370_s27 = sld [smem:[#allocation15_spill]] }
 0x1ce   : > { %p23_p0 = scmp.ge.s32.totalorder %s26_s23, 4   ;;  %s1371_s18 = smov %s986_s19 }
 0x1cf   : > { %s1372_s19 = smov %s990_s20  ;;  %s1373_s20 = smov %s1150_s30 }
 0x1d0   : > { %s1374_s21 = smov %s998_s22  ;;  %25 = sbr.rel (!%p23_p0) target bundleno = 11 (0xb), region = 122 }
 0x1d3   : > { %s1375_s22 = smov %s1370_s27 }
 0x1d5   :  { %534 = vsyncpa [#allocation3], 1 }
 0x1d6   :  { %536 = vsyncpa [#allocation3 + $0x1], 1 }
 0x1d7   :  { %537 = vsyncpa [#allocation6], 1 }
 0x1d8   :  { %538 = vsyncpa [#allocation4], 1 }
 0x1d9   :  { %540 = vsyncpa [#allocation4 + $0x1], 1 }
 0x1da   :  { %541 = vsyncpa [#allocation9], 1 }
 0x1db   :  { %543 = vsyncpa [#allocation9 + $0x1], 1 }

// kernel: tpu_custom_call.1
= control target key start
LH: loop header
LB: loop body
LE: loop exit
PB: predicated region body
PF: predicated region fallthrough
CT: control target
= control target key end

     0   :  { %s1345_s0 = inlined_call_operand.hbm [shape: f32[2,8,32], index: 0, kind: input, shape index: {}]   ;;  %s1346_s1 = inlined_call_operand.hbm [shape: f32[32,96], index: 1, kind: input, shape index: {}]   ;;  %s1347_s2 = inlined_call_operand.vmem [shape: f32[1,96], index: 2, kind: input, shape index: {}]   ;;  %s1348_s3 = inlined_call_operand.hbm [shape: f32[2,4,8,8], index: 3, kind: output, shape index: {0}]   ;;  %s1349_s4 = inlined_call_operand.hbm [shape: f32[2,4,8,8], index: 4, kind: output, shape index: {1}]   ;;  %s1350_s5 = inlined_call_operand.hbm [shape: f32[2,4,8,8], index: 5, kind: output, shape index: {2}]  }
   0x1   :  { %1354 = sst [smem:[#allocation16_spill]] %s1346_s1 }
   0x2   :  { %11 = vsyncpa [#allocation3], 0 }
   0x3   :  { %13 = vsyncpa [#allocation3 + $0x1], 0 }
   0x4   :  { %14 = vsyncpa [#allocation6], 0 }
   0x5   :  { %15 = vsyncpa [#allocation4], 0 }
   0x6   :  { %17 = vsyncpa [#allocation4 + $0x1], 0 }
   0x7   :  { %18 = vsyncpa [#allocation9], 0 }
   0x8   :  { %20 = vsyncpa [#allocation9 + $0x1], 0  ;;  %s1056_s18 = smov 0   ;;  %s1058_s19 = smov 0  }
   0x9   :  { %s1060_s20 = smov 0   ;;  %s1062_s21 = smov 0  }
   0xa   :  { %s1064_s22 = smov 0   ;;  %s1066_s23 = smov 0  }
   0xb LB: > { %s1087_s24 = sadd.s32 4294967295, %s1002_s23   ;;  %s1351_s25 = sadd.s32 4294967294, %s1002_s23   ;;  %s1002_s23 = sphi %s1066_s23, %s26_s23   ;;  %s998_s22 = sphi %s1064_s22, %s1375_s22   ;;  %s994_s21 = sphi %s1062_s21, %s1374_s21   ;;  %s990_s20 = sphi %s1060_s20, %s1373_s20   ;;  %s986_s19 = sphi %s1058_s19, %s1372_s19   ;;  %s982_s18 = sphi %s1056_s18, %s1371_s18  }
   0xc   : > { %p60_p0 = scmp.ne.s32.totalorder %s986_s19, %s982_s18  ;;  %p1353_p1 = scmp.eq.s32.totalorder %s1087_s24, 0 }
   0xd   : > { %p134_p3 = scmp.eq.s32.totalorder %s1351_s25, 1  ;;  %p656_p5 = scmp.ge.s32.totalorder %s1002_s23, 1 }
   0xe   : > { %p1098_p4 = por %p1353_p1, %p60_p0  ;;  %p197_p7 = scmp.lt.s32.totalorder %s1002_s23, 3 }
   0xf   : > { %p1103_p6 = por %p134_p3, %p60_p0  ;;  %s1004_s29 = smov [#allocation5]  }
  0x10   : > { %p1108_p8 = pnand %p656_p5, %p197_p7  ;;  %s209_s30 = sshll.u32 %s1004_s29, 4  ;;  %s210_s30 = int_to_ptr.vmem [resolvable:$true] %s209_s30 }
  0x11   : > { %s1356_s27 = scalar_select %p1103_p6, 1, 0 }
  0x12   : > { %p720_p9 = pneg %p1108_p8  ;;  %s38_s7 = sadd.s32 1, %s998_s22 }
  0x13   : > { %s819_s8 = scalar_lea.vmem %s210_s30, 512  ;;  %p827_p5 = scmp.lt.s32.totalorder %s210_s30, %s210_s30 }
  0x14   : > { %p1117_p11 = pnand %p720_p9, %p1353_p1  ;;  %p820_p13 = scmp.ne.s32.totalorder %s210_s30, %s819_s8 }
  0x15   : > { %p828_p7 = scmp.lt.s32.totalorder %s819_s8, %s819_s8 }
  0x16   : > { %p810_p12 = pneg %p1117_p11 }
  0x17   : > { %p829_p2 = por %p828_p7, %p827_p5 }
  0x18   : > { %p822_p0 = pnand %p820_p13, %p810_p12 }
  0x1a   : > { %p823_p3 = pneg %p822_p0 }
  0x1c   : > { %p830_p6 = pnand %p829_p2, %p823_p3 }
  0x1e   : > { %833 = shalt.err (!%p830_p6)
}
  0x1f   : > { %s1005_s9 = smov 128   ;;  %s1006_s10 = smov 8  }
  0x20   : > { %s1359_s1 = sld [smem:[#allocation16_spill]]  ;;  %p40_p2 = scmp.ge.s32.totalorder %s38_s7, 2 }
  0x21   : > { %s47_s13 = sadd.s32 1, %s990_s20  ;;  %p54_p6 = scmp.ne.s32.totalorder %s990_s20, %s986_s19 }
  0x22   : > { %p55_p9 = scmp.eq.s32.totalorder %s1002_s23, 0  ;;  %s1377_s7 = smov (%p40_p2, %s38_s7), 0 }
  0x23   : > { %1360 = sst [smem:[#allocation15_spill]] %s1377_s7  ;;  %p1362_p13 = scmp.eq.s32.totalorder %s1087_s24, 1 }
  0x24   : > { %p1135_p12 = por %p55_p9, %p54_p6  ;;  %s42_s16 = ssub.s32 %s998_s22, %s1377_s7 }
  0x25   : > { %p1141_p0 = por %p1362_p13, %p54_p6  ;;  %p739_p3 = scmp.lt.s32.totalorder %s1002_s23, 2 }
  0x26   : > { %723 = dma.hbm_to_vmem [thread:$0]  (!%p1117_p11), %s1359_s1, 512, %s210_s30, [#allocation6], %s1005_s9, %s1005_s9, %s1006_s10  }
  0x27   : > { %p45_p11 = scmp.eq.s32.totalorder %s42_s16, 0  ;;  %s226_s17 = sand.u32 1, %s990_s20  }
  0x28   : > { %s659_s29 = sshll.u32 %s226_s17, 3  ;;  %s660_s6 = sshll.u32 %s998_s22, 7 }
  0x29   : > { %s1150_s30 = scalar_select %p45_p11, %s990_s20, %s47_s13  }
  0x2a   : > { %s236_s10 = scalar_lea.hbm %s1345_s0, %s660_s6  ;;  %s230_s11 = scalar_lea.vmem [#allocation2], %s659_s29 }
  0x2b   : > { %s238_s12 = sshll.u32 %s230_s11, 4  ;;  %p1158_p5 = pnand %p739_p3, %p1135_p12  ;;  %s239_s12 = int_to_ptr.vmem [resolvable:$true] %s238_s12 }
  0x2c   : > { %s227_s1 = scalar_lea.sflag [#allocation3], %s226_s17  ;;  %s847_s16 = scalar_lea.vmem %s239_s12, 128 }
  0x2d   : > { %p836_p7 = pneg %p1158_p5  ;;  %p848_p2 = scmp.ne.s32.totalorder %s239_s12, %s847_s16 }
  0x2e   : > { %s1007_s13 = smov [#allocation2]  }
  0x2f   : > { %p850_p6 = pnand %p848_p2, %p836_p7  ;;  %s852_s7 = sshll.u32 %s1007_s13, 4  ;;  %s853_s7 = int_to_ptr.vmem [resolvable:$false] %s852_s7 }
  0x30   : > { %s854_s6 = scalar_lea.vmem %s853_s7, 256  ;;  %p855_p13 = scmp.lt.s32.totalorder %s239_s12, %s853_s7 }
  0x31   : > { %p851_p9 = pneg %p850_p6  ;;  %p856_p11 = scmp.lt.s32.totalorder %s854_s6, %s847_s16 }
  0x33   : > { %p857_p10 = por %p856_p11, %p855_p13 }
  0x35   : > { %p858_p1 = pnand %p857_p10, %p851_p9 }
  0x37   : > { %861 = shalt.err (!%p858_p1)
}
  0x38   : > { %727 = dma.hbm_to_vmem [thread:$0]  (!%p1158_p5), %s236_s10, 128, %s239_s12, %s227_s1  }
  0x39   : > { %247 = sbr.rel (%p1108_p8) target bundleno = 449 (0x1c1), region = 32  ;;  %s1169_s14 = sand.u32 (!%p1108_p8), 1, %s986_s19  }
  0x3a   : > { %s662_s17 = sshll.u32 (!%p1108_p8), %s1169_s14, 3  ;;  %s250_s29 = scalar_lea.sflag (!%p1108_p8), [#allocation3], %s1169_s14 }
  0x3b   : > { %s253_s8 = scalar_lea.vmem (!%p1108_p8), [#allocation2], %s662_s17 }
  0x3e   : > { %965 = dma.done.wait (%p1098_p4), %s250_s29, 128  }
  0x3f   : > { %967 = vsyncadd (%p1098_p4), %s250_s29, 4294967168  ;;  %p1365_p1 = scmp.eq.s32.totalorder %s1087_s24, 0 }
  0x41   : > { %969 = dma.done.wait (%p1365_p1), [#allocation6], 512   ;;  %p1366_p10 = pmov %p1365_p1 }
  0x42   : > { %v1008_v0 = vmov 0.0   ;;  %vm1009_vm0 = vmmov 0   ;;  %v298_v1 = vld [vmem:[#allocation5 + $0x18] sm:$0xff]  ;;  %v297_v2 = vld [vmem:[#allocation5 + $0x10] sm:$0xff]  ;;  %v296_v3 = vld [vmem:[#allocation5 + $0x8] sm:$0xff]  ;;  %vm306_vm1 = vcmask 261120  }
  0x43   : > { %971 = vsyncadd (%p1366_p10), [#allocation6], 4294966784  ;;  %697 = vmatprep.subr.mxu0 %v1008_v0  ;;  %705 = vmatprep.mubr.msk.f32.mxu0 %vm1009_vm0, %v1008_v0  ;;  %v295_v4 = vld [vmem:[#allocation5] sm:$0xff]  ;;  %v294_v5 = vld [vmem:[%s253_s8] sm:$0xff]  ;;  %s1182_s1 = sshll.u32 %s1169_s14, 5  ;;  %vm380_vm2 = vcmask 64512  }
  0x44   : > { %698 = vmatpush3.msra.mxu0 %v298_v1  ;;  %v667_v6 = vld [vmem:[%s1347_s2] ss:$0 sm:$0xff]  ;;  %s1010_s28 = smov 80   ;;  %s1011_s7 = smov 96  }
  0x45   : > { %699 = vmatprep.subr.mxu0 %v1008_v0  ;;  %s1188_s9 = scalar_lea.vmem [#allocation7], %s1182_s1  ;;  %s1012_s10 = smov 72  }
  0x46   : > { %700 = vmatpush3.msra.mxu0 %v297_v2  ;;  %s1013_s11 = smov 88   ;;  %s1014_s12 = smov 120  }
  0x47   : > { %701 = vmatprep.subr.mxu0 %v1008_v0  ;;  %s1015_s16 = smov 64   ;;  %s1016_s13 = smov 112  }
  0x48   : > { %702 = vmatpush3.msra.mxu0 %v296_v3  ;;  %s1017_s6 = smov 56   ;;  %s1018_s17 = smov 104  }
  0x49   : > { %703 = vmatprep.subr.mxu0 %v1008_v0  ;;  %s1019_s29 = smov 48   ;;  %s1020_s8 = smov 40  }
  0x4a   : > { %704 = vmatpush3.msra.mxu0 %v295_v4  ;;  %s286_s25 = scalar_lea.vmem [#allocation8], %s1182_s1 }
  0x4b   : > { %706 = vmatmul.mubr.msk.f32.vlgmr.msra.gmra.mxu0 %vm306_vm1, %v294_v5  ;;  %s478_s26 = sshll.u32 %s286_s25, 4  ;;  %s1197_s26 = int_to_ptr.vmem [resolvable:$true] %s478_s26 }
 0x10b   : > { %v376_v7 = vpop.f32.mrf.mxu0 }
 0x10c   : > { %v377_v8 = vadd.f32 %v667_v6, %v376_v7 }
 0x10d   : > { %v707_v9 = vpop.f32.mrf.mxu0 }
 0x10e   : > { %411 = vrot.lane.b32.xlu1 %v377_v8, %s1010_s28  ;;  %383 = vrot.lane.b32.xlu0 %v377_v8, %s1011_s7  ;;  %381 = vst.msk [vmem:[%s1188_s9] sm:$0xff] %vm380_vm2, %v377_v8  ;;  %s441_s28 = sand.u32 1, %s1087_s24   ;;  %s1195_s7 = sshll.u32 %s994_s21, 9 }
 0x10f   : > { %s1209_s21 = scalar_lea.sflag [#allocation9], %s441_s28  ;;  %s862_s24 = scalar_lea.vmem %s1197_s26, 512 }
 0x110   : > { %p863_p4 = scmp.ne.s32.totalorder %s1197_s26, %s862_s24 }
 0x112   : > { %426 = vrot.lane.b32.xlu1 %v377_v8, %s1012_s10  ;;  %396 = vrot.lane.b32.xlu0 %v377_v8, %s1013_s11  ;;  %p864_p8 = pnand %p863_p4, %p1141_p0 }
 0x114   : > { %p865_p12 = pneg %p864_p8 }
 0x116   : > { %391 = vrot.lane.b32.xlu1 %v377_v8, %s1014_s12  ;;  %387 = vrot.lane.b32.xlu0 %v377_v8, %s1015_s16  ;;  %s1205_s12 = scalar_lea.hbm %s1349_s4, %s1195_s7  ;;  %s1021_s16 = smov [#allocation8]  }
 0x11a   : > { %406 = vrot.lane.b32.xlu1 %v377_v8, %s1016_s13  ;;  %401 = vrot.lane.b32.xlu0 %v377_v8, %s1017_s6  ;;  %s866_s13 = sshll.u32 %s1021_s16, 4  ;;  %s867_s13 = int_to_ptr.vmem [resolvable:$false] %s866_s13 }
 0x11b   : > { %s868_s6 = scalar_lea.vmem %s867_s13, 1024  ;;  %p869_p3 = scmp.lt.s32.totalorder %s1197_s26, %s867_s13 }
 0x11c   : > { %p870_p5 = scmp.lt.s32.totalorder %s868_s6, %s862_s24 }
 0x11e   : > { %421 = vrot.lane.b32.xlu1 %v377_v8, %s1018_s17  ;;  %416 = vrot.lane.b32.xlu0 %v377_v8, %s1019_s29  ;;  %p871_p7 = por %p870_p5, %p869_p3 }
 0x120   : > { %p872_p2 = pnand %p871_p7, %p865_p12 }
 0x122   : > { %431 = vrot.lane.b32.xlu0 %v377_v8, %s1020_s8 }
 0x180   : > { %v412_v10 = vpop.permute.xlu1 %411  ;;  %v384_v11 = vpop.permute.xlu0 %383 }
 0x181   : > { %673 = vst.msk [vmem:[%s286_s25 + $0x10] sm:$0xff] %vm380_vm2, %v412_v10  ;;  %386 = vst.msk [vmem:[%s286_s25] sm:$0xff] %vm380_vm2, %v384_v11 }
 0x184   : > { %v427_v12 = vpop.permute.xlu1 %426  ;;  %v397_v13 = vpop.permute.xlu0 %396 }
 0x185   : > { %676 = vst.msk [vmem:[%s286_s25 + $0x18] sm:$0xff] %vm380_vm2, %v427_v12  ;;  %670 = vst.msk [vmem:[%s286_s25 + $0x8] sm:$0xff] %vm380_vm2, %v397_v13 }
 0x186   : > { %875 = shalt.err (!%p872_p2)
}
 0x187   : > { %s876_s17 = scalar_lea.hbm %s1205_s12, 512  ;;  %s880_s25 = scalar_lea.hbm %s1349_s4, 1024 }
 0x188   : > { %p877_p6 = scmp.ne.s32.totalorder %s1205_s12, %s876_s17  ;;  %p881_p11 = scmp.lt.s32.totalorder %s1205_s12, %s1349_s4 }
 0x189   : > { %p882_p1 = scmp.lt.s32.totalorder %s880_s25, %s876_s17 }
 0x18a   : > { %p878_p9 = pnand %p877_p6, %p1141_p0 }
 0x18b   : > { %p883_p10 = por %p882_p1, %p881_p11 }
 0x18c   : > { %p879_p13 = pneg %p878_p9 }
 0x18e   : > { %p884_p4 = pnand %p883_p10, %p879_p13 }
 0x190   : > { %887 = shalt.err (!%p884_p4)
}
 0x191   : > { %s1022_s11 = smov 128   ;;  %s1023_s24 = smov 8   ;;  %v392_v14 = vpop.permute.xlu1 %391  ;;  %v388_v15 = vpop.permute.xlu0 %387 }
 0x192   : > { %715 = dma.vmem_to_hbm [thread:$0]  (%p1141_p0), %s1197_s26, 512, %s1205_s12, %s1209_s21, %s1022_s11, %s1022_s11, %s1023_s24  }
 0x193   : > { %669 = vst.msk [vmem:[%s1188_s9 + $0x8] sm:$0xff] %vm380_vm2, %v392_v14  ;;  %s1238_s16 = scalar_lea.vmem [#allocation10], %s1182_s1  ;;  %s461_s13 = sshll.u32 %s1188_s9, 4  ;;  %s1247_s13 = int_to_ptr.vmem [resolvable:$true] %s461_s13 }
 0x194   : > { %390 = vst.msk [vmem:[%s1238_s16] sm:$0xff] %vm380_vm2, %v388_v15  ;;  %s1253_s1 = scalar_lea.hbm %s1348_s3, %s1195_s7  ;;  %s495_s6 = sshll.u32 %s1238_s16, 4  ;;  %s1286_s6 = int_to_ptr.vmem [resolvable:$true] %s495_s6 }
 0x195   : > { %v407_v16 = vpop.permute.xlu1 %406  ;;  %v402_v17 = vpop.permute.xlu0 %401  ;;  %s437_s17 = scalar_lea.sflag [#allocation4], %s1169_s14  ;;  %s888_s29 = scalar_lea.vmem %s1247_s13, 512 }
 0x196   : > { %672 = vst.msk [vmem:[%s1188_s9 + $0x10] sm:$0xff] %vm380_vm2, %v407_v16  ;;  %671 = vst.msk [vmem:[%s1238_s16 + $0x8] sm:$0xff] %vm380_vm2, %v402_v17  ;;  %p889_p8 = scmp.ne.s32.totalorder %s1247_s13, %s888_s29  ;;  %s1024_s8 = smov [#allocation7]  }
 0x197   : > { %s892_s25 = sshll.u32 %s1024_s8, 4  ;;  %s893_s25 = int_to_ptr.vmem [resolvable:$false] %s892_s25 }
 0x198   : > { %p890_p12 = pnand %p889_p8, %p1141_p0  ;;  %s894_s28 = scalar_lea.vmem %s893_s25, 1024 }
 0x199   : > { %v422_v18 = vpop.permute.xlu1 %421  ;;  %v417_v19 = vpop.permute.xlu0 %416  ;;  %p895_p5 = scmp.lt.s32.totalorder %s1247_s13, %s893_s25  ;;  %p896_p7 = scmp.lt.s32.totalorder %s894_s28, %s888_s29 }
 0x19a   : > { %675 = vst.msk [vmem:[%s1188_s9 + $0x18] sm:$0xff] %vm380_vm2, %v422_v18  ;;  %674 = vst.msk [vmem:[%s1238_s16 + $0x10] sm:$0xff] %vm380_vm2, %v417_v19  ;;  %p891_p3 = pneg %p890_p12 }
 0x19b   : > { %p897_p2 = por %p896_p7, %p895_p5 }
 0x19d   : > { %p898_p6 = pnand %p897_p2, %p891_p3 }
 0x19f   : > { %901 = shalt.err (!%p898_p6)
}
 0x1a0   : > { %s902_s9 = scalar_lea.hbm %s1253_s1, 512  ;;  %s906_s26 = scalar_lea.hbm %s1348_s3, 1024 }
 0x1a1   : > { %p903_p9 = scmp.ne.s32.totalorder %s1253_s1, %s902_s9  ;;  %p907_p1 = scmp.lt.s32.totalorder %s1253_s1, %s1348_s3 }
 0x1a2   : > { %p908_p10 = scmp.lt.s32.totalorder %s906_s26, %s902_s9 }
 0x1a3   : > { %p904_p13 = pnand %p903_p9, %p1141_p0 }
 0x1a4   : > { %p909_p4 = por %p908_p10, %p907_p1 }
 0x1a5   : > { %p905_p11 = pneg %p904_p13 }
 0x1a7   : > { %p910_p8 = pnand %p909_p4, %p905_p11 }
 0x1a9   : > { %913 = shalt.err (!%p910_p8)
}
 0x1aa   : > { %714 = dma.vmem_to_hbm [thread:$0]  (%p1141_p0), %s1247_s13, 512, %s1253_s1, %s437_s17, %s1022_s11, %s1022_s11, %s1023_s24   ;;  %v432_v20 = vpop.permute.xlu0 %431 }
 0x1ab   : > { %s1292_s28 = scalar_lea.hbm %s1350_s5, %s1195_s7  ;;  %677 = vst.msk [vmem:[%s1238_s16 + $0x18] sm:$0xff] %vm380_vm2, %v432_v20  ;;  %s914_s9 = scalar_lea.vmem %s1286_s6, 512 }
 0x1ac   : > { %p915_p12 = scmp.ne.s32.totalorder %s1286_s6, %s914_s9  ;;  %s1025_s13 = smov [#allocation10]  }
 0x1ad   : > { %s918_s1 = sshll.u32 %s1025_s13, 4  ;;  %s919_s1 = int_to_ptr.vmem [resolvable:$false] %s918_s1 }
 0x1ae   : > { %p916_p3 = pnand %p915_p12, %p1141_p0  ;;  %s920_s17 = scalar_lea.vmem %s919_s1, 1024 }
 0x1af   : > { %p921_p7 = scmp.lt.s32.totalorder %s1286_s6, %s919_s1  ;;  %p922_p2 = scmp.lt.s32.totalorder %s920_s17, %s914_s9 }
 0x1b0   : > { %p917_p5 = pneg %p916_p3 }
 0x1b1   : > { %p923_p6 = por %p922_p2, %p921_p7 }
 0x1b3   : > { %p924_p9 = pnand %p923_p6, %p917_p5 }
 0x1b5   : > { %927 = shalt.err (!%p924_p9)
}
 0x1b6   : > { %s928_s7 = scalar_lea.hbm %s1292_s28, 512  ;;  %s932_s10 = scalar_lea.hbm %s1350_s5, 1024 }
 0x1b7   : > { %p929_p13 = scmp.ne.s32.totalorder %s1292_s28, %s928_s7  ;;  %p933_p10 = scmp.lt.s32.totalorder %s1292_s28, %s1350_s5 }
 0x1b8   : > { %p934_p4 = scmp.lt.s32.totalorder %s932_s10, %s928_s7 }
 0x1b9   : > { %p930_p11 = pnand %p929_p13, %p1141_p0 }
 0x1ba   : > { %p935_p8 = por %p934_p4, %p933_p10 }
 0x1bb   : > { %p931_p1 = pneg %p930_p11 }
 0x1bd   : > { %p936_p12 = pnand %p935_p8, %p931_p1 }
 0x1bf   : > { %939 = shalt.err (!%p936_p12)
}
 0x1c0   : > { %716 = dma.vmem_to_hbm [thread:$0]  (%p1141_p0), %s1286_s6, 512, %s1292_s28, %s1209_s21, %s1022_s11, %s1022_s11, %s1023_s24  }
 0x1c1 PF: > { %s510_s8 = sand.u32 1, %s982_s18   ;;  %p1367_p3 = scmp.ne.s32.totalorder %s1356_s27, 0 }
 0x1c2   : > { %p1368_p5 = scmp.ge.s32.totalorder %s1002_s23, 2  ;;  %s511_s29 = scalar_lea.sflag [#allocation4], %s510_s8 }
 0x1c4   : > { %p729_p7 = pnand %p1368_p5, %p1367_p3 }
 0x1c6   : > { %p730_p2 = pneg %p729_p7 }
 0x1c8   : > { %973 = dma.done.wait (%p730_p2), %s511_s29, 512  }
 0x1c9   : > { %975 = vsyncadd (%p730_p2), %s511_s29, 4294966784  ;;  %s1369_s15 = sadd.s32 4294967294, %s1002_s23  }
 0x1ca   : > { %s519_s25 = sand.u32 1, %s1369_s15  }
 0x1cb   : > { %s520_s9 = scalar_lea.sflag [#allocation9], %s519_s25 }
 0x1cc   : > { %977 = dma.done.wait (%p730_p2), %s520_s9, 1024  }
 0x1cd   : > { %979 = vsyncadd (%p730_p2), %s520_s9, 4294966272  ;;  %s26_s23 = sadd.s32 1, %s1002_s23   ;;  %s1370_s27 = sld [smem:[#allocation15_spill]] }
 0x1ce   : > { %p23_p0 = scmp.ge.s32.totalorder %s26_s23, 4   ;;  %s1371_s18 = smov %s986_s19 }
 0x1cf   : > { %s1372_s19 = smov %s990_s20  ;;  %s1373_s20 = smov %s1150_s30 }
 0x1d0   : > { %s1374_s21 = smov %s998_s22  ;;  %25 = sbr.rel (!%p23_p0) target bundleno = 11 (0xb), region = 122 }
 0x1d3   : > { %s1375_s22 = smov %s1370_s27 }
 0x1d5   :  { %534 = vsyncpa [#allocation3], 1 }
 0x1d6   :  { %536 = vsyncpa [#allocation3 + $0x1], 1 }
 0x1d7   :  { %537 = vsyncpa [#allocation6], 1 }
 0x1d8   :  { %538 = vsyncpa [#allocation4], 1 }
 0x1d9   :  { %540 = vsyncpa [#allocation4 + $0x1], 1 }
 0x1da   :  { %541 = vsyncpa [#allocation9], 1 }
 0x1db   :  { %543 = vsyncpa [#allocation9 + $0x1], 1 }

</bundles_post_ra>
